<compile_context>
chip_gen: v7x
topology: tpu7x:2x2x1
jax: 0.10.0
libtpu: 0.0.40
codegen_flags: <defaults>
</compile_context>

<pallas_src>
import functools
import math

import jax
import jax.numpy as jnp
from jax.experimental import pallas as pl
from jax.experimental.pallas import tpu as pltpu

EPS = 1e-5  # nn.BatchNorm2d default


# ---------------------------------------------------------------------------
# Fused kernel: maxpool 2x2 -> conv3x3+BN+ReLU -> conv3x3+BN+ReLU
# Compute layout inside the kernel is channels-last (H2, W2, C).
# ---------------------------------------------------------------------------
def _unet_layer_kernel(x_ref, w1_ref, b1_ref, w2_ref, b2_ref, o_ref,
                       xpad_ref, mpad_ref, *, H2, W2, Cin, Cout):
    P = H2 * W2
    f32 = jnp.float32
    bf16 = jnp.bfloat16

    # ---- zero only the 1-px halo border of the padded scratch buffers ------
    # (interior is fully overwritten below; done every step so it is correct
    #  even if the parallel batch axis is split across TensorCores)
    for pad_ref, C in ((xpad_ref, Cin), (mpad_ref, Cout)):
        pad_ref[0:1, :, :] = jnp.zeros((1, W2 + 2, C), f32)
        pad_ref[H2 + 1:H2 + 2, :, :] = jnp.zeros((1, W2 + 2, C), f32)
        pad_ref[:, 0:1, :] = jnp.zeros((H2 + 2, 1, C), f32)
        pad_ref[:, W2 + 1:W2 + 2, :] = jnp.zeros((H2 + 2, 1, C), f32)

    # ---- MaxPool2d(2): elementwise max of the four pre-split window slabs --
    pooled = jnp.maximum(jnp.maximum(x_ref[0], x_ref[1]),
                         jnp.maximum(x_ref[2], x_ref[3]))        # (H2, W2, Cin)
    xpad_ref[1:H2 + 1, 1:W2 + 1, :] = pooled

    # ---- conv1 3x3 (BN1 folded into w1/b1): 9 accumulated tap matmuls ------
    acc = jnp.zeros((P, Cout), f32)
    for a in range(3):
        strip = xpad_ref[a:a + H2, :, :]                         # (H2, W2+2, Cin)
        for b in range(3):
            win = strip[:, b:b + W2, :].reshape(P, Cin).astype(bf16)
            acc = acc + jnp.dot(win, w1_ref[a * 3 + b],
                                preferred_element_type=f32)
    h = jnp.maximum(acc + b1_ref[...], 0.0)                      # (P, Cout) f32
    mpad_ref[1:H2 + 1, 1:W2 + 1, :] = h.reshape(H2, W2, Cout)

    # ---- conv2 3x3 (BN2 folded into w2/b2): 9 accumulated tap matmuls ------
    acc2 = jnp.zeros((P, Cout), f32)
    for a in range(3):
        strip = mpad_ref[a:a + H2, :, :]                         # (H2, W2+2, Cout)
        for b in range(3):
            win = strip[:, b:b + W2, :].reshape(P, Cout).astype(bf16)
            acc2 = acc2 + jnp.dot(win, w2_ref[a * 3 + b],
                                  preferred_element_type=f32)
    o_ref[...] = jnp.maximum(acc2 + b2_ref[...], 0.0).astype(o_ref.dtype)


# ---------------------------------------------------------------------------
# (8,128)-tile padded VMEM footprint of one buffer (for the vmem limit).
# ---------------------------------------------------------------------------
def _tile_padded_bytes(shape, dtype):
    item = jnp.dtype(dtype).itemsize
    shape = (1,) * max(0, 2 - len(shape)) + tuple(shape)
    sub_tile = 8 * max(1, 4 // item)              # f32: 8, bf16: 16
    lead = math.prod(shape[:-2])
    sub = -(-shape[-2] // sub_tile) * sub_tile
    lane = -(-shape[-1] // 128) * 128
    return lead * sub * lane * item


# ---------------------------------------------------------------------------
# Wrapper: NCHW in / NCHW out.  BN folding + 2x2-window pre-split are the glue.
# ---------------------------------------------------------------------------
def unet_layer_forward(x_nchw, p):
    N, Cin, H, W = x_nchw.shape
    Cout = p["w1"].shape[0]
    H2, W2 = H // 2, W // 2
    P = H2 * W2

    # pre-split the 2x2 pooling windows onto a leading axis, channels last
    xw = x_nchw.reshape(N, Cin, H2, 2, W2, 2)
    xw = xw.transpose(0, 3, 5, 2, 4, 1).reshape(N, 4, H2, W2, Cin)

    # fold eval-mode BatchNorms into conv weights / biases; pack per-tap as
    # (9, Cin, Cout) bf16 so tap k = 3*a + b is one MXU operand.
    s1 = p["bn1_gamma"] / jnp.sqrt(p["bn1_var"] + EPS)
    w1 = (p["w1"] * s1[:, None, None, None]).transpose(2, 3, 1, 0) \
        .reshape(9, Cin, Cout).astype(jnp.bfloat16)
    b1 = (p["bn1_beta"] - p["bn1_mean"] * s1).reshape(1, Cout).astype(jnp.float32)
    s2 = p["bn2_gamma"] / jnp.sqrt(p["bn2_var"] + EPS)
    w2 = (p["w2"] * s2[:, None, None, None]).transpose(2, 3, 1, 0) \
        .reshape(9, Cout, Cout).astype(jnp.bfloat16)
    b2 = (p["bn2_beta"] - p["bn2_mean"] * s2).reshape(1, Cout).astype(jnp.float32)

    # VMEM budget from the real tile-padded working set (double-buffered
    # inputs / outputs / weights + persistent padded scratch), clamped so it
    # stays under the v7x 64 MiB physical ceiling.
    work = (
        2 * _tile_padded_bytes((4, H2, W2, Cin), jnp.float32)       # input block
        + 2 * _tile_padded_bytes((P, Cout), jnp.float32)            # output block
        + 2 * (_tile_padded_bytes((9, Cin, Cout), jnp.bfloat16)
               + _tile_padded_bytes((9, Cout, Cout), jnp.bfloat16)
               + 2 * _tile_padded_bytes((1, Cout), jnp.float32))    # weights/bias
        + _tile_padded_bytes((H2 + 2, W2 + 2, Cin), jnp.float32)    # xpad scratch
        + _tile_padded_bytes((H2 + 2, W2 + 2, Cout), jnp.float32)   # mpad scratch
    )
    vmem_limit = int(min(max(work * 5 // 4 + (2 << 20), 16 << 20), 56 << 20))

    body = functools.partial(_unet_layer_kernel, H2=H2, W2=W2, Cin=Cin, Cout=Cout)
    y = pl.pallas_call(
        body,
        out_shape=jax.ShapeDtypeStruct((N, P, Cout), jnp.float32),
        grid_spec=pltpu.PrefetchScalarGridSpec(
            num_scalar_prefetch=0,
            grid=(N,),
            in_specs=[
                pl.BlockSpec((pl.Squeezed(), 4, H2, W2, Cin),
                             lambda n: (n, 0, 0, 0, 0)),
                pl.BlockSpec((9, Cin, Cout), lambda n: (0, 0, 0)),
                pl.BlockSpec((1, Cout), lambda n: (0, 0)),
                pl.BlockSpec((9, Cout, Cout), lambda n: (0, 0, 0)),
                pl.BlockSpec((1, Cout), lambda n: (0, 0)),
            ],
            out_specs=pl.BlockSpec((pl.Squeezed(), P, Cout),
                                   lambda n: (n, 0, 0)),
            scratch_shapes=[
                pltpu.VMEM((H2 + 2, W2 + 2, Cin), jnp.float32),   # padded pooled x
                pltpu.VMEM((H2 + 2, W2 + 2, Cout), jnp.float32),  # padded mid act
            ],
        ),
        compiler_params=pltpu.CompilerParams(
            dimension_semantics=("parallel",),
            vmem_limit_bytes=vmem_limit,
        ),
    )(xw, w1, b1, w2, b2)

    return y.reshape(N, H2, W2, Cout).transpose(0, 3, 1, 2)  # NHWC -> NCHW


# ---------------------------------------------------------------------------
# Parameters (deterministic synthetic init, PyTorch shapes)
# ---------------------------------------------------------------------------
def init_params(key, in_channels, out_channels):
    C = out_channels
    ks = jax.random.split(key, 10)
    return {
        "w1": 0.2 * jax.random.normal(ks[0], (C, in_channels, 3, 3), jnp.float32),
        "bn1_gamma": jax.random.uniform(ks[1], (C,), jnp.float32, 0.5, 1.5),
        "bn1_beta": 0.1 * jax.random.normal(ks[2], (C,), jnp.float32),
        "bn1_mean": 0.1 * jax.random.normal(ks[3], (C,), jnp.float32),
        "bn1_var": jax.random.uniform(ks[4], (C,), jnp.float32, 0.5, 1.5),
        "w2": 0.2 * jax.random.normal(ks[5], (C, C, 3, 3), jnp.float32),
        "bn2_gamma": jax.random.uniform(ks[6], (C,), jnp.float32, 0.5, 1.5),
        "bn2_beta": 0.1 * jax.random.normal(ks[7], (C,), jnp.float32),
        "bn2_mean": 0.1 * jax.random.normal(ks[8], (C,), jnp.float32),
        "bn2_var": jax.random.uniform(ks[9], (C,), jnp.float32, 0.5, 1.5),
    }


# ---------------------------------------------------------------------------
# Independent pure-JAX reference (f32) for the correctness check
# ---------------------------------------------------------------------------
def reference_forward(x, p):
    N, Cin, H, W = x.shape
    H2, W2 = H // 2, W // 2
    y = x.reshape(N, Cin, H2, 2, W2, 2).max(axis=(3, 5))   # MaxPool2d(2)

    def conv_bn_relu(y, w, gamma, beta, mean, var):
        y = jax.lax.conv_general_dilated(
            y, w, window_strides=(1, 1), padding=((1, 1), (1, 1)),
            dimension_numbers=("NCHW", "OIHW", "NCHW"))
        s = gamma / jnp.sqrt(var + EPS)
        y = y * s[None, :, None, None] + (beta - mean * s)[None, :, None, None]
        return jnp.maximum(y, 0.0)

    y = conv_bn_relu(y, p["w1"], p["bn1_gamma"], p["bn1_beta"],
                     p["bn1_mean"], p["bn1_var"])
    y = conv_bn_relu(y, p["w2"], p["bn2_gamma"], p["bn2_beta"],
                     p["bn2_mean"], p["bn2_var"])
    return y


if __name__ == "__main__":
    key = jax.random.PRNGKey(0)
    kx, kp = jax.random.split(key)
    in_channels, out_channels = 4, 8
    x = jax.random.normal(kx, (2, in_channels, 16, 16), jnp.float32)
    params = init_params(kp, in_channels, out_channels)

    out = jax.block_until_ready(jax.jit(unet_layer_forward)(x, params))
    ref = jax.block_until_ready(reference_forward(x, params))

    assert out.shape == (2, out_channels, 8, 8), out.shape
    max_err = float(jnp.max(jnp.abs(out - ref)))
    # bf16 MXU operands through two chained convs -> magnitude-relative tol.
    tol = 3e-2 * float(jnp.max(jnp.abs(ref))) + 5e-3
    assert max_err < tol, f"mismatch vs reference: {max_err} (tol {tol})"
    print("KERNEL_OK")
</pallas_src>

<mosaic_0001>
module attributes {stable_mosaic.version = 11 : i64} {
  func.func @_unet_layer_kernel(%arg0: i32, %arg1: memref<1x4x8x8x4xf32, #tpu.memory_space<vmem>>, %arg2: memref<9x4x8xbf16, #tpu.memory_space<vmem>>, %arg3: memref<1x8xf32, #tpu.memory_space<vmem>>, %arg4: memref<9x8x8xbf16, #tpu.memory_space<vmem>>, %arg5: memref<1x8xf32, #tpu.memory_space<vmem>>, %arg6: memref<1x64x8xf32, #tpu.memory_space<vmem>>, %arg7: memref<10x10x4xf32, #tpu.memory_space<vmem>>, %arg8: memref<10x10x8xf32, #tpu.memory_space<vmem>>) attributes {dimension_semantics = [#tpu.dimension_semantics<parallel>], iteration_bounds = array<i64: 2>, scalar_prefetch = 0 : i64, scratch_operands = 2 : i64, tpu.core_type = #tpu.core_type<tc>, window_params = [{transform_indices = @transform_0, window_bounds = array<i64: 1, 4, 8, 8, 4>}, {pipeline_mode = #tpu.pipeline_mode<synchronous>, transform_indices = @transform_1, window_bounds = array<i64: 9, 4, 8>}, {pipeline_mode = #tpu.pipeline_mode<synchronous>, transform_indices = @transform_2, window_bounds = array<i64: 1, 8>}, {pipeline_mode = #tpu.pipeline_mode<synchronous>, transform_indices = @transform_3, window_bounds = array<i64: 9, 8, 8>}, {pipeline_mode = #tpu.pipeline_mode<synchronous>, transform_indices = @transform_4, window_bounds = array<i64: 1, 8>}, {transform_indices = @transform_5, window_bounds = array<i64: 1, 64, 8>}]} {
    %cst = arith.constant 0.000000e+00 : f32
    %0 = vector.broadcast %cst : f32 to vector<1x10x4xf32>
    %c0 = arith.constant 0 : index
    %c0_0 = arith.constant 0 : index
    %c0_1 = arith.constant 0 : index
    %1 = vector.load %arg7[%c0, %c0_0, %c0_1] : memref<10x10x4xf32, #tpu.memory_space<vmem>>, vector<1x10x4xf32>
    tpu.vector_store %arg7[%c0, %c0_0, %c0_1], %0 {strides = array<i32>} : memref<10x10x4xf32, #tpu.memory_space<vmem>>, vector<1x10x4xf32>,
    %cst_2 = arith.constant 0.000000e+00 : f32
    %2 = vector.broadcast %cst_2 : f32 to vector<1x10x4xf32>
    %c9 = arith.constant 9 : index
    %c0_3 = arith.constant 0 : index
    %c0_4 = arith.constant 0 : index
    %3 = vector.load %arg7[%c9, %c0_3, %c0_4] : memref<10x10x4xf32, #tpu.memory_space<vmem>>, vector<1x10x4xf32>
    tpu.vector_store %arg7[%c9, %c0_3, %c0_4], %2 {strides = array<i32>} : memref<10x10x4xf32, #tpu.memory_space<vmem>>, vector<1x10x4xf32>,
    %cst_5 = arith.constant 0.000000e+00 : f32
    %4 = vector.broadcast %cst_5 : f32 to vector<10x1x4xf32>
    %c0_6 = arith.constant 0 : index
    %c0_7 = arith.constant 0 : index
    %c0_8 = arith.constant 0 : index
    %5 = vector.load %arg7[%c0_6, %c0_7, %c0_8] : memref<10x10x4xf32, #tpu.memory_space<vmem>>, vector<10x1x4xf32>
    tpu.vector_store %arg7[%c0_6, %c0_7, %c0_8], %4 {strides = array<i32>} : memref<10x10x4xf32, #tpu.memory_space<vmem>>, vector<10x1x4xf32>,
    %cst_9 = arith.constant 0.000000e+00 : f32
    %6 = vector.broadcast %cst_9 : f32 to vector<10x1x4xf32>
    %c0_10 = arith.constant 0 : index
    %c9_11 = arith.constant 9 : index
    %c0_12 = arith.constant 0 : index
    %7 = vector.load %arg7[%c0_10, %c9_11, %c0_12] : memref<10x10x4xf32, #tpu.memory_space<vmem>>, vector<10x1x4xf32>
    tpu.vector_store %arg7[%c0_10, %c9_11, %c0_12], %6 {strides = array<i32>} : memref<10x10x4xf32, #tpu.memory_space<vmem>>, vector<10x1x4xf32>,
    %cst_13 = arith.constant 0.000000e+00 : f32
    %8 = vector.broadcast %cst_13 : f32 to vector<1x10x8xf32>
    %c0_14 = arith.constant 0 : index
    %c0_15 = arith.constant 0 : index
    %c0_16 = arith.constant 0 : index
    %9 = vector.load %arg8[%c0_14, %c0_15, %c0_16] : memref<10x10x8xf32, #tpu.memory_space<vmem>>, vector<1x10x8xf32>
    tpu.vector_store %arg8[%c0_14, %c0_15, %c0_16], %8 {strides = array<i32>} : memref<10x10x8xf32, #tpu.memory_space<vmem>>, vector<1x10x8xf32>,
    %cst_17 = arith.constant 0.000000e+00 : f32
    %10 = vector.broadcast %cst_17 : f32 to vector<1x10x8xf32>
    %c9_18 = arith.constant 9 : index
    %c0_19 = arith.constant 0 : index
    %c0_20 = arith.constant 0 : index
    %11 = vector.load %arg8[%c9_18, %c0_19, %c0_20] : memref<10x10x8xf32, #tpu.memory_space<vmem>>, vector<1x10x8xf32>
    tpu.vector_store %arg8[%c9_18, %c0_19, %c0_20], %10 {strides = array<i32>} : memref<10x10x8xf32, #tpu.memory_space<vmem>>, vector<1x10x8xf32>,
    %cst_21 = arith.constant 0.000000e+00 : f32
    %12 = vector.broadcast %cst_21 : f32 to vector<10x1x8xf32>
    %c0_22 = arith.constant 0 : index
    %c0_23 = arith.constant 0 : index
    %c0_24 = arith.constant 0 : index
    %13 = vector.load %arg8[%c0_22, %c0_23, %c0_24] : memref<10x10x8xf32, #tpu.memory_space<vmem>>, vector<10x1x8xf32>
    tpu.vector_store %arg8[%c0_22, %c0_23, %c0_24], %12 {strides = array<i32>} : memref<10x10x8xf32, #tpu.memory_space<vmem>>, vector<10x1x8xf32>,
    %cst_25 = arith.constant 0.000000e+00 : f32
    %14 = vector.broadcast %cst_25 : f32 to vector<10x1x8xf32>
    %c0_26 = arith.constant 0 : index
    %c9_27 = arith.constant 9 : index
    %c0_28 = arith.constant 0 : index
    %15 = vector.load %arg8[%c0_26, %c9_27, %c0_28] : memref<10x10x8xf32, #tpu.memory_space<vmem>>, vector<10x1x8xf32>
    tpu.vector_store %arg8[%c0_26, %c9_27, %c0_28], %14 {strides = array<i32>} : memref<10x10x8xf32, #tpu.memory_space<vmem>>, vector<10x1x8xf32>,
    %c0_29 = arith.constant 0 : index
    %c0_30 = arith.constant 0 : index
    %c0_31 = arith.constant 0 : index
    %c0_32 = arith.constant 0 : index
    %c0_33 = arith.constant 0 : index
    %16 = vector.load %arg1[%c0_29, %c0_30, %c0_31, %c0_32, %c0_33] : memref<1x4x8x8x4xf32, #tpu.memory_space<vmem>>, vector<1x1x8x8x4xf32>
    %17 = vector.shape_cast %16 : vector<1x1x8x8x4xf32> to vector<8x8x4xf32>
    %c0_34 = arith.constant 0 : index
    %c1 = arith.constant 1 : index
    %c0_35 = arith.constant 0 : index
    %c0_36 = arith.constant 0 : index
    %c0_37 = arith.constant 0 : index
    %18 = vector.load %arg1[%c0_34, %c1, %c0_35, %c0_36, %c0_37] : memref<1x4x8x8x4xf32, #tpu.memory_space<vmem>>, vector<1x1x8x8x4xf32>
    %19 = vector.shape_cast %18 : vector<1x1x8x8x4xf32> to vector<8x8x4xf32>
    %20 = arith.maximumf %17, %19 : vector<8x8x4xf32>
    %c0_38 = arith.constant 0 : index
    %c2 = arith.constant 2 : index
    %c0_39 = arith.constant 0 : index
    %c0_40 = arith.constant 0 : index
    %c0_41 = arith.constant 0 : index
    %21 = vector.load %arg1[%c0_38, %c2, %c0_39, %c0_40, %c0_41] : memref<1x4x8x8x4xf32, #tpu.memory_space<vmem>>, vector<1x1x8x8x4xf32>
    %22 = vector.shape_cast %21 : vector<1x1x8x8x4xf32> to vector<8x8x4xf32>
    %c0_42 = arith.constant 0 : index
    %c3 = arith.constant 3 : index
    %c0_43 = arith.constant 0 : index
    %c0_44 = arith.constant 0 : index
    %c0_45 = arith.constant 0 : index
    %23 = vector.load %arg1[%c0_42, %c3, %c0_43, %c0_44, %c0_45] : memref<1x4x8x8x4xf32, #tpu.memory_space<vmem>>, vector<1x1x8x8x4xf32>
    %24 = vector.shape_cast %23 : vector<1x1x8x8x4xf32> to vector<8x8x4xf32>
    %25 = arith.maximumf %22, %24 : vector<8x8x4xf32>
    %26 = arith.maximumf %20, %25 : vector<8x8x4xf32>
    %c1_46 = arith.constant 1 : index
    %c1_47 = arith.constant 1 : index
    %c0_48 = arith.constant 0 : index
    %27 = vector.load %arg7[%c1_46, %c1_47, %c0_48] : memref<10x10x4xf32, #tpu.memory_space<vmem>>, vector<8x8x4xf32>
    tpu.vector_store %arg7[%c1_46, %c1_47, %c0_48], %26 {strides = array<i32>} : memref<10x10x4xf32, #tpu.memory_space<vmem>>, vector<8x8x4xf32>,
    %cst_49 = arith.constant 0.000000e+00 : f32
    %28 = vector.broadcast %cst_49 : f32 to vector<64x8xf32>
    %c0_50 = arith.constant 0 : index
    %c0_51 = arith.constant 0 : index
    %c0_52 = arith.constant 0 : index
    %29 = vector.load %arg7[%c0_50, %c0_51, %c0_52] : memref<10x10x4xf32, #tpu.memory_space<vmem>>, vector<8x10x4xf32>
    %30 = vector.extract_strided_slice %29 {offsets = [0, 0, 0], sizes = [8, 8, 4], strides = [1, 1, 1]} : vector<8x10x4xf32> to vector<8x8x4xf32>
    %31 = vector.shape_cast %30 : vector<8x8x4xf32> to vector<64x4xf32>
    %32 = arith.truncf %31 : vector<64x4xf32> to vector<64x4xbf16>
    %c0_53 = arith.constant 0 : index
    %c0_54 = arith.constant 0 : index
    %c0_55 = arith.constant 0 : index
    %33 = vector.load %arg2[%c0_53, %c0_54, %c0_55] : memref<9x4x8xbf16, #tpu.memory_space<vmem>>, vector<1x4x8xbf16>
    %34 = vector.shape_cast %33 : vector<1x4x8xbf16> to vector<4x8xbf16>
    %cst_56 = arith.constant dense<0.000000e+00> : vector<64x8xf32>
    %35 = tpu.matmul %32, %34, %cst_56 {dimension_numbers = #tpu.dot_dimension_numbers<[1], [0], [0], [1], [0, 0, 1, 1], [], []>} : vector<64x4xbf16>, vector<4x8xbf16>, vector<64x8xf32> -> vector<64x8xf32>
    %36 = arith.addf %28, %35 : vector<64x8xf32>
    %37 = vector.extract_strided_slice %29 {offsets = [0, 1, 0], sizes = [8, 8, 4], strides = [1, 1, 1]} : vector<8x10x4xf32> to vector<8x8x4xf32>
    %38 = vector.shape_cast %37 : vector<8x8x4xf32> to vector<64x4xf32>
    %39 = arith.truncf %38 : vector<64x4xf32> to vector<64x4xbf16>
    %c1_57 = arith.constant 1 : index
    %c0_58 = arith.constant 0 : index
    %c0_59 = arith.constant 0 : index
    %40 = vector.load %arg2[%c1_57, %c0_58, %c0_59] : memref<9x4x8xbf16, #tpu.memory_space<vmem>>, vector<1x4x8xbf16>
    %41 = vector.shape_cast %40 : vector<1x4x8xbf16> to vector<4x8xbf16>
    %cst_60 = arith.constant dense<0.000000e+00> : vector<64x8xf32>
    %42 = tpu.matmul %39, %41, %cst_60 {dimension_numbers = #tpu.dot_dimension_numbers<[1], [0], [0], [1], [0, 0, 1, 1], [], []>} : vector<64x4xbf16>, vector<4x8xbf16>, vector<64x8xf32> -> vector<64x8xf32>
    %43 = arith.addf %36, %42 : vector<64x8xf32>
    %44 = vector.extract_strided_slice %29 {offsets = [0, 2, 0], sizes = [8, 8, 4], strides = [1, 1, 1]} : vector<8x10x4xf32> to vector<8x8x4xf32>
    %45 = vector.shape_cast %44 : vector<8x8x4xf32> to vector<64x4xf32>
    %46 = arith.truncf %45 : vector<64x4xf32> to vector<64x4xbf16>
    %c2_61 = arith.constant 2 : index
    %c0_62 = arith.constant 0 : index
    %c0_63 = arith.constant 0 : index
    %47 = vector.load %arg2[%c2_61, %c0_62, %c0_63] : memref<9x4x8xbf16, #tpu.memory_space<vmem>>, vector<1x4x8xbf16>
    %48 = vector.shape_cast %47 : vector<1x4x8xbf16> to vector<4x8xbf16>
    %cst_64 = arith.constant dense<0.000000e+00> : vector<64x8xf32>
    %49 = tpu.matmul %46, %48, %cst_64 {dimension_numbers = #tpu.dot_dimension_numbers<[1], [0], [0], [1], [0, 0, 1, 1], [], []>} : vector<64x4xbf16>, vector<4x8xbf16>, vector<64x8xf32> -> vector<64x8xf32>
    %50 = arith.addf %43, %49 : vector<64x8xf32>
    %c1_65 = arith.constant 1 : index
    %c0_66 = arith.constant 0 : index
    %c0_67 = arith.constant 0 : index
    %51 = vector.load %arg7[%c1_65, %c0_66, %c0_67] : memref<10x10x4xf32, #tpu.memory_space<vmem>>, vector<8x10x4xf32>
    %52 = vector.extract_strided_slice %51 {offsets = [0, 0, 0], sizes = [8, 8, 4], strides = [1, 1, 1]} : vector<8x10x4xf32> to vector<8x8x4xf32>
    %53 = vector.shape_cast %52 : vector<8x8x4xf32> to vector<64x4xf32>
    %54 = arith.truncf %53 : vector<64x4xf32> to vector<64x4xbf16>
    %c3_68 = arith.constant 3 : index
    %c0_69 = arith.constant 0 : index
    %c0_70 = arith.constant 0 : index
    %55 = vector.load %arg2[%c3_68, %c0_69, %c0_70] : memref<9x4x8xbf16, #tpu.memory_space<vmem>>, vector<1x4x8xbf16>
    %56 = vector.shape_cast %55 : vector<1x4x8xbf16> to vector<4x8xbf16>
    %cst_71 = arith.constant dense<0.000000e+00> : vector<64x8xf32>
    %57 = tpu.matmul %54, %56, %cst_71 {dimension_numbers = #tpu.dot_dimension_numbers<[1], [0], [0], [1], [0, 0, 1, 1], [], []>} : vector<64x4xbf16>, vector<4x8xbf16>, vector<64x8xf32> -> vector<64x8xf32>
    %58 = arith.addf %50, %57 : vector<64x8xf32>
    %59 = vector.extract_strided_slice %51 {offsets = [0, 1, 0], sizes = [8, 8, 4], strides = [1, 1, 1]} : vector<8x10x4xf32> to vector<8x8x4xf32>
    %60 = vector.shape_cast %59 : vector<8x8x4xf32> to vector<64x4xf32>
    %61 = arith.truncf %60 : vector<64x4xf32> to vector<64x4xbf16>
    %c4 = arith.constant 4 : index
    %c0_72 = arith.constant 0 : index
    %c0_73 = arith.constant 0 : index
    %62 = vector.load %arg2[%c4, %c0_72, %c0_73] : memref<9x4x8xbf16, #tpu.memory_space<vmem>>, vector<1x4x8xbf16>
    %63 = vector.shape_cast %62 : vector<1x4x8xbf16> to vector<4x8xbf16>
    %cst_74 = arith.constant dense<0.000000e+00> : vector<64x8xf32>
    %64 = tpu.matmul %61, %63, %cst_74 {dimension_numbers = #tpu.dot_dimension_numbers<[1], [0], [0], [1], [0, 0, 1, 1], [], []>} : vector<64x4xbf16>, vector<4x8xbf16>, vector<64x8xf32> -> vector<64x8xf32>
    %65 = arith.addf %58, %64 : vector<64x8xf32>
    %66 = vector.extract_strided_slice %51 {offsets = [0, 2, 0], sizes = [8, 8, 4], strides = [1, 1, 1]} : vector<8x10x4xf32> to vector<8x8x4xf32>
    %67 = vector.shape_cast %66 : vector<8x8x4xf32> to vector<64x4xf32>
    %68 = arith.truncf %67 : vector<64x4xf32> to vector<64x4xbf16>
    %c5 = arith.constant 5 : index
    %c0_75 = arith.constant 0 : index
    %c0_76 = arith.constant 0 : index
    %69 = vector.load %arg2[%c5, %c0_75, %c0_76] : memref<9x4x8xbf16, #tpu.memory_space<vmem>>, vector<1x4x8xbf16>
    %70 = vector.shape_cast %69 : vector<1x4x8xbf16> to vector<4x8xbf16>
    %cst_77 = arith.constant dense<0.000000e+00> : vector<64x8xf32>
    %71 = tpu.matmul %68, %70, %cst_77 {dimension_numbers = #tpu.dot_dimension_numbers<[1], [0], [0], [1], [0, 0, 1, 1], [], []>} : vector<64x4xbf16>, vector<4x8xbf16>, vector<64x8xf32> -> vector<64x8xf32>
    %72 = arith.addf %65, %71 : vector<64x8xf32>
    %c2_78 = arith.constant 2 : index
    %c0_79 = arith.constant 0 : index
    %c0_80 = arith.constant 0 : index
    %73 = vector.load %arg7[%c2_78, %c0_79, %c0_80] : memref<10x10x4xf32, #tpu.memory_space<vmem>>, vector<8x10x4xf32>
    %74 = vector.extract_strided_slice %73 {offsets = [0, 0, 0], sizes = [8, 8, 4], strides = [1, 1, 1]} : vector<8x10x4xf32> to vector<8x8x4xf32>
    %75 = vector.shape_cast %74 : vector<8x8x4xf32> to vector<64x4xf32>
    %76 = arith.truncf %75 : vector<64x4xf32> to vector<64x4xbf16>
    %c6 = arith.constant 6 : index
    %c0_81 = arith.constant 0 : index
    %c0_82 = arith.constant 0 : index
    %77 = vector.load %arg2[%c6, %c0_81, %c0_82] : memref<9x4x8xbf16, #tpu.memory_space<vmem>>, vector<1x4x8xbf16>
    %78 = vector.shape_cast %77 : vector<1x4x8xbf16> to vector<4x8xbf16>
    %cst_83 = arith.constant dense<0.000000e+00> : vector<64x8xf32>
    %79 = tpu.matmul %76, %78, %cst_83 {dimension_numbers = #tpu.dot_dimension_numbers<[1], [0], [0], [1], [0, 0, 1, 1], [], []>} : vector<64x4xbf16>, vector<4x8xbf16>, vector<64x8xf32> -> vector<64x8xf32>
    %80 = arith.addf %72, %79 : vector<64x8xf32>
    %81 = vector.extract_strided_slice %73 {offsets = [0, 1, 0], sizes = [8, 8, 4], strides = [1, 1, 1]} : vector<8x10x4xf32> to vector<8x8x4xf32>
    %82 = vector.shape_cast %81 : vector<8x8x4xf32> to vector<64x4xf32>
    %83 = arith.truncf %82 : vector<64x4xf32> to vector<64x4xbf16>
    %c7 = arith.constant 7 : index
    %c0_84 = arith.constant 0 : index
    %c0_85 = arith.constant 0 : index
    %84 = vector.load %arg2[%c7, %c0_84, %c0_85] : memref<9x4x8xbf16, #tpu.memory_space<vmem>>, vector<1x4x8xbf16>
    %85 = vector.shape_cast %84 : vector<1x4x8xbf16> to vector<4x8xbf16>
    %cst_86 = arith.constant dense<0.000000e+00> : vector<64x8xf32>
    %86 = tpu.matmul %83, %85, %cst_86 {dimension_numbers = #tpu.dot_dimension_numbers<[1], [0], [0], [1], [0, 0, 1, 1], [], []>} : vector<64x4xbf16>, vector<4x8xbf16>, vector<64x8xf32> -> vector<64x8xf32>
    %87 = arith.addf %80, %86 : vector<64x8xf32>
    %88 = vector.extract_strided_slice %73 {offsets = [0, 2, 0], sizes = [8, 8, 4], strides = [1, 1, 1]} : vector<8x10x4xf32> to vector<8x8x4xf32>
    %89 = vector.shape_cast %88 : vector<8x8x4xf32> to vector<64x4xf32>
    %90 = arith.truncf %89 : vector<64x4xf32> to vector<64x4xbf16>
    %c8 = arith.constant 8 : index
    %c0_87 = arith.constant 0 : index
    %c0_88 = arith.constant 0 : index
    %91 = vector.load %arg2[%c8, %c0_87, %c0_88] : memref<9x4x8xbf16, #tpu.memory_space<vmem>>, vector<1x4x8xbf16>
    %92 = vector.shape_cast %91 : vector<1x4x8xbf16> to vector<4x8xbf16>
    %cst_89 = arith.constant dense<0.000000e+00> : vector<64x8xf32>
    %93 = tpu.matmul %90, %92, %cst_89 {dimension_numbers = #tpu.dot_dimension_numbers<[1], [0], [0], [1], [0, 0, 1, 1], [], []>} : vector<64x4xbf16>, vector<4x8xbf16>, vector<64x8xf32> -> vector<64x8xf32>
    %94 = arith.addf %87, %93 : vector<64x8xf32>
    %c0_90 = arith.constant 0 : index
    %c0_91 = arith.constant 0 : index
    %95 = vector.load %arg3[%c0_90, %c0_91] : memref<1x8xf32, #tpu.memory_space<vmem>>, vector<1x8xf32>
    %96 = vector.broadcast %95 : vector<1x8xf32> to vector<64x8xf32>
    %97 = arith.addf %94, %96 : vector<64x8xf32>
    %cst_92 = arith.constant 0.000000e+00 : f32
    %98 = vector.broadcast %cst_92 : f32 to vector<64x8xf32>
    %99 = arith.maximumf %97, %98 : vector<64x8xf32>
    %100 = vector.shape_cast %99 : vector<64x8xf32> to vector<8x8x8xf32>
    %c1_93 = arith.constant 1 : index
    %c1_94 = arith.constant 1 : index
    %c0_95 = arith.constant 0 : index
    %101 = vector.load %arg8[%c1_93, %c1_94, %c0_95] : memref<10x10x8xf32, #tpu.memory_space<vmem>>, vector<8x8x8xf32>
    tpu.vector_store %arg8[%c1_93, %c1_94, %c0_95], %100 {strides = array<i32>} : memref<10x10x8xf32, #tpu.memory_space<vmem>>, vector<8x8x8xf32>,
    %cst_96 = arith.constant 0.000000e+00 : f32
    %102 = vector.broadcast %cst_96 : f32 to vector<64x8xf32>
    %c0_97 = arith.constant 0 : index
    %c0_98 = arith.constant 0 : index
    %c0_99 = arith.constant 0 : index
    %103 = vector.load %arg8[%c0_97, %c0_98, %c0_99] : memref<10x10x8xf32, #tpu.memory_space<vmem>>, vector<8x10x8xf32>
    %104 = vector.extract_strided_slice %103 {offsets = [0, 0, 0], sizes = [8, 8, 8], strides = [1, 1, 1]} : vector<8x10x8xf32> to vector<8x8x8xf32>
    %105 = vector.shape_cast %104 : vector<8x8x8xf32> to vector<64x8xf32>
    %106 = arith.truncf %105 : vector<64x8xf32> to vector<64x8xbf16>
    %c0_100 = arith.constant 0 : index
    %c0_101 = arith.constant 0 : index
    %c0_102 = arith.constant 0 : index
    %107 = vector.load %arg4[%c0_100, %c0_101, %c0_102] : memref<9x8x8xbf16, #tpu.memory_space<vmem>>, vector<1x8x8xbf16>
    %108 = vector.shape_cast %107 : vector<1x8x8xbf16> to vector<8x8xbf16>
    %cst_103 = arith.constant dense<0.000000e+00> : vector<64x8xf32>
    %109 = tpu.matmul %106, %108, %cst_103 {dimension_numbers = #tpu.dot_dimension_numbers<[1], [0], [0], [1], [0, 0, 1, 1], [], []>} : vector<64x8xbf16>, vector<8x8xbf16>, vector<64x8xf32> -> vector<64x8xf32>
    %110 = arith.addf %102, %109 : vector<64x8xf32>
    %111 = vector.extract_strided_slice %103 {offsets = [0, 1, 0], sizes = [8, 8, 8], strides = [1, 1, 1]} : vector<8x10x8xf32> to vector<8x8x8xf32>
    %112 = vector.shape_cast %111 : vector<8x8x8xf32> to vector<64x8xf32>
    %113 = arith.truncf %112 : vector<64x8xf32> to vector<64x8xbf16>
    %c1_104 = arith.constant 1 : index
    %c0_105 = arith.constant 0 : index
    %c0_106 = arith.constant 0 : index
    %114 = vector.load %arg4[%c1_104, %c0_105, %c0_106] : memref<9x8x8xbf16, #tpu.memory_space<vmem>>, vector<1x8x8xbf16>
    %115 = vector.shape_cast %114 : vector<1x8x8xbf16> to vector<8x8xbf16>
    %cst_107 = arith.constant dense<0.000000e+00> : vector<64x8xf32>
    %116 = tpu.matmul %113, %115, %cst_107 {dimension_numbers = #tpu.dot_dimension_numbers<[1], [0], [0], [1], [0, 0, 1, 1], [], []>} : vector<64x8xbf16>, vector<8x8xbf16>, vector<64x8xf32> -> vector<64x8xf32>
    %117 = arith.addf %110, %116 : vector<64x8xf32>
    %118 = vector.extract_strided_slice %103 {offsets = [0, 2, 0], sizes = [8, 8, 8], strides = [1, 1, 1]} : vector<8x10x8xf32> to vector<8x8x8xf32>
    %119 = vector.shape_cast %118 : vector<8x8x8xf32> to vector<64x8xf32>
    %120 = arith.truncf %119 : vector<64x8xf32> to vector<64x8xbf16>
    %c2_108 = arith.constant 2 : index
    %c0_109 = arith.constant 0 : index
    %c0_110 = arith.constant 0 : index
    %121 = vector.load %arg4[%c2_108, %c0_109, %c0_110] : memref<9x8x8xbf16, #tpu.memory_space<vmem>>, vector<1x8x8xbf16>
    %122 = vector.shape_cast %121 : vector<1x8x8xbf16> to vector<8x8xbf16>
    %cst_111 = arith.constant dense<0.000000e+00> : vector<64x8xf32>
    %123 = tpu.matmul %120, %122, %cst_111 {dimension_numbers = #tpu.dot_dimension_numbers<[1], [0], [0], [1], [0, 0, 1, 1], [], []>} : vector<64x8xbf16>, vector<8x8xbf16>, vector<64x8xf32> -> vector<64x8xf32>
    %124 = arith.addf %117, %123 : vector<64x8xf32>
    %c1_112 = arith.constant 1 : index
    %c0_113 = arith.constant 0 : index
    %c0_114 = arith.constant 0 : index
    %125 = vector.load %arg8[%c1_112, %c0_113, %c0_114] : memref<10x10x8xf32, #tpu.memory_space<vmem>>, vector<8x10x8xf32>
    %126 = vector.extract_strided_slice %125 {offsets = [0, 0, 0], sizes = [8, 8, 8], strides = [1, 1, 1]} : vector<8x10x8xf32> to vector<8x8x8xf32>
    %127 = vector.shape_cast %126 : vector<8x8x8xf32> to vector<64x8xf32>
    %128 = arith.truncf %127 : vector<64x8xf32> to vector<64x8xbf16>
    %c3_115 = arith.constant 3 : index
    %c0_116 = arith.constant 0 : index
    %c0_117 = arith.constant 0 : index
    %129 = vector.load %arg4[%c3_115, %c0_116, %c0_117] : memref<9x8x8xbf16, #tpu.memory_space<vmem>>, vector<1x8x8xbf16>
    %130 = vector.shape_cast %129 : vector<1x8x8xbf16> to vector<8x8xbf16>
    %cst_118 = arith.constant dense<0.000000e+00> : vector<64x8xf32>
    %131 = tpu.matmul %128, %130, %cst_118 {dimension_numbers = #tpu.dot_dimension_numbers<[1], [0], [0], [1], [0, 0, 1, 1], [], []>} : vector<64x8xbf16>, vector<8x8xbf16>, vector<64x8xf32> -> vector<64x8xf32>
    %132 = arith.addf %124, %131 : vector<64x8xf32>
    %133 = vector.extract_strided_slice %125 {offsets = [0, 1, 0], sizes = [8, 8, 8], strides = [1, 1, 1]} : vector<8x10x8xf32> to vector<8x8x8xf32>
    %134 = vector.shape_cast %133 : vector<8x8x8xf32> to vector<64x8xf32>
    %135 = arith.truncf %134 : vector<64x8xf32> to vector<64x8xbf16>
    %c4_119 = arith.constant 4 : index
    %c0_120 = arith.constant 0 : index
    %c0_121 = arith.constant 0 : index
    %136 = vector.load %arg4[%c4_119, %c0_120, %c0_121] : memref<9x8x8xbf16, #tpu.memory_space<vmem>>, vector<1x8x8xbf16>
    %137 = vector.shape_cast %136 : vector<1x8x8xbf16> to vector<8x8xbf16>
    %cst_122 = arith.constant dense<0.000000e+00> : vector<64x8xf32>
    %138 = tpu.matmul %135, %137, %cst_122 {dimension_numbers = #tpu.dot_dimension_numbers<[1], [0], [0], [1], [0, 0, 1, 1], [], []>} : vector<64x8xbf16>, vector<8x8xbf16>, vector<64x8xf32> -> vector<64x8xf32>
    %139 = arith.addf %132, %138 : vector<64x8xf32>
    %140 = vector.extract_strided_slice %125 {offsets = [0, 2, 0], sizes = [8, 8, 8], strides = [1, 1, 1]} : vector<8x10x8xf32> to vector<8x8x8xf32>
    %141 = vector.shape_cast %140 : vector<8x8x8xf32> to vector<64x8xf32>
    %142 = arith.truncf %141 : vector<64x8xf32> to vector<64x8xbf16>
    %c5_123 = arith.constant 5 : index
    %c0_124 = arith.constant 0 : index
    %c0_125 = arith.constant 0 : index
    %143 = vector.load %arg4[%c5_123, %c0_124, %c0_125] : memref<9x8x8xbf16, #tpu.memory_space<vmem>>, vector<1x8x8xbf16>
    %144 = vector.shape_cast %143 : vector<1x8x8xbf16> to vector<8x8xbf16>
    %cst_126 = arith.constant dense<0.000000e+00> : vector<64x8xf32>
    %145 = tpu.matmul %142, %144, %cst_126 {dimension_numbers = #tpu.dot_dimension_numbers<[1], [0], [0], [1], [0, 0, 1, 1], [], []>} : vector<64x8xbf16>, vector<8x8xbf16>, vector<64x8xf32> -> vector<64x8xf32>
    %146 = arith.addf %139, %145 : vector<64x8xf32>
    %c2_127 = arith.constant 2 : index
    %c0_128 = arith.constant 0 : index
    %c0_129 = arith.constant 0 : index
    %147 = vector.load %arg8[%c2_127, %c0_128, %c0_129] : memref<10x10x8xf32, #tpu.memory_space<vmem>>, vector<8x10x8xf32>
    %148 = vector.extract_strided_slice %147 {offsets = [0, 0, 0], sizes = [8, 8, 8], strides = [1, 1, 1]} : vector<8x10x8xf32> to vector<8x8x8xf32>
    %149 = vector.shape_cast %148 : vector<8x8x8xf32> to vector<64x8xf32>
    %150 = arith.truncf %149 : vector<64x8xf32> to vector<64x8xbf16>
    %c6_130 = arith.constant 6 : index
    %c0_131 = arith.constant 0 : index
    %c0_132 = arith.constant 0 : index
    %151 = vector.load %arg4[%c6_130, %c0_131, %c0_132] : memref<9x8x8xbf16, #tpu.memory_space<vmem>>, vector<1x8x8xbf16>
    %152 = vector.shape_cast %151 : vector<1x8x8xbf16> to vector<8x8xbf16>
    %cst_133 = arith.constant dense<0.000000e+00> : vector<64x8xf32>
    %153 = tpu.matmul %150, %152, %cst_133 {dimension_numbers = #tpu.dot_dimension_numbers<[1], [0], [0], [1], [0, 0, 1, 1], [], []>} : vector<64x8xbf16>, vector<8x8xbf16>, vector<64x8xf32> -> vector<64x8xf32>
    %154 = arith.addf %146, %153 : vector<64x8xf32>
    %155 = vector.extract_strided_slice %147 {offsets = [0, 1, 0], sizes = [8, 8, 8], strides = [1, 1, 1]} : vector<8x10x8xf32> to vector<8x8x8xf32>
    %156 = vector.shape_cast %155 : vector<8x8x8xf32> to vector<64x8xf32>
    %157 = arith.truncf %156 : vector<64x8xf32> to vector<64x8xbf16>
    %c7_134 = arith.constant 7 : index
    %c0_135 = arith.constant 0 : index
    %c0_136 = arith.constant 0 : index
    %158 = vector.load %arg4[%c7_134, %c0_135, %c0_136] : memref<9x8x8xbf16, #tpu.memory_space<vmem>>, vector<1x8x8xbf16>
    %159 = vector.shape_cast %158 : vector<1x8x8xbf16> to vector<8x8xbf16>
    %cst_137 = arith.constant dense<0.000000e+00> : vector<64x8xf32>
    %160 = tpu.matmul %157, %159, %cst_137 {dimension_numbers = #tpu.dot_dimension_numbers<[1], [0], [0], [1], [0, 0, 1, 1], [], []>} : vector<64x8xbf16>, vector<8x8xbf16>, vector<64x8xf32> -> vector<64x8xf32>
    %161 = arith.addf %154, %160 : vector<64x8xf32>
    %162 = vector.extract_strided_slice %147 {offsets = [0, 2, 0], sizes = [8, 8, 8], strides = [1, 1, 1]} : vector<8x10x8xf32> to vector<8x8x8xf32>
    %163 = vector.shape_cast %162 : vector<8x8x8xf32> to vector<64x8xf32>
    %164 = arith.truncf %163 : vector<64x8xf32> to vector<64x8xbf16>
    %c8_138 = arith.constant 8 : index
    %c0_139 = arith.constant 0 : index
    %c0_140 = arith.constant 0 : index
    %165 = vector.load %arg4[%c8_138, %c0_139, %c0_140] : memref<9x8x8xbf16, #tpu.memory_space<vmem>>, vector<1x8x8xbf16>
    %166 = vector.shape_cast %165 : vector<1x8x8xbf16> to vector<8x8xbf16>
    %cst_141 = arith.constant dense<0.000000e+00> : vector<64x8xf32>
    %167 = tpu.matmul %164, %166, %cst_141 {dimension_numbers = #tpu.dot_dimension_numbers<[1], [0], [0], [1], [0, 0, 1, 1], [], []>} : vector<64x8xbf16>, vector<8x8xbf16>, vector<64x8xf32> -> vector<64x8xf32>
    %168 = arith.addf %161, %167 : vector<64x8xf32>
    %c0_142 = arith.constant 0 : index
    %c0_143 = arith.constant 0 : index
    %169 = vector.load %arg5[%c0_142, %c0_143] : memref<1x8xf32, #tpu.memory_space<vmem>>, vector<1x8xf32>
    %170 = vector.broadcast %169 : vector<1x8xf32> to vector<64x8xf32>
    %171 = arith.addf %168, %170 : vector<64x8xf32>
    %cst_144 = arith.constant 0.000000e+00 : f32
    %172 = vector.broadcast %cst_144 : f32 to vector<64x8xf32>
    %173 = arith.maximumf %171, %172 : vector<64x8xf32>
    %c0_145 = arith.constant 0 : index
    %c0_146 = arith.constant 0 : index
    %c0_147 = arith.constant 0 : index
    %174 = vector.load %arg6[%c0_145, %c0_146, %c0_147] : memref<1x64x8xf32, #tpu.memory_space<vmem>>, vector<1x64x8xf32>
    %175 = vector.shape_cast %174 : vector<1x64x8xf32> to vector<64x8xf32>
    %176 = vector.shape_cast %173 : vector<64x8xf32> to vector<1x64x8xf32>
    tpu.vector_store %arg6[%c0_145, %c0_146, %c0_147], %176 {strides = array<i32>} : memref<1x64x8xf32, #tpu.memory_space<vmem>>, vector<1x64x8xf32>,
    return
  }
  func.func @transform_0(%arg0: i32) -> (i32, i32, i32, i32, i32) {
    %c0_i32 = arith.constant 0 : i32
    %c0_i32_0 = arith.constant 0 : i32
    %c0_i32_1 = arith.constant 0 : i32
    %c0_i32_2 = arith.constant 0 : i32
    %c0_i32_3 = arith.constant 0 : i32
    return %arg0, %c0_i32, %c0_i32_0, %c0_i32_1, %c0_i32_2 : i32, i32, i32, i32, i32
  }
  func.func @transform_1(%arg0: i32) -> (i32, i32, i32) {
    %c0_i32 = arith.constant 0 : i32
    %c0_i32_0 = arith.constant 0 : i32
    %c0_i32_1 = arith.constant 0 : i32
    %c0_i32_2 = arith.constant 0 : i32
    return %c0_i32, %c0_i32_0, %c0_i32_1 : i32, i32, i32
  }
  func.func @transform_2(%arg0: i32) -> (i32, i32) {
    %c0_i32 = arith.constant 0 : i32
    %c0_i32_0 = arith.constant 0 : i32
    %c0_i32_1 = arith.constant 0 : i32
    return %c0_i32, %c0_i32_0 : i32, i32
  }
  func.func @transform_3(%arg0: i32) -> (i32, i32, i32) {
    %c0_i32 = arith.constant 0 : i32
    %c0_i32_0 = arith.constant 0 : i32
    %c0_i32_1 = arith.constant 0 : i32
    %c0_i32_2 = arith.constant 0 : i32
    return %c0_i32, %c0_i32_0, %c0_i32_1 : i32, i32, i32
  }
  func.func @transform_4(%arg0: i32) -> (i32, i32) {
    %c0_i32 = arith.constant 0 : i32
    %c0_i32_0 = arith.constant 0 : i32
    %c0_i32_1 = arith.constant 0 : i32
    return %c0_i32, %c0_i32_0 : i32, i32
  }
  func.func @transform_5(%arg0: i32) -> (i32, i32, i32) {
    %c0_i32 = arith.constant 0 : i32
    %c0_i32_0 = arith.constant 0 : i32
    %c0_i32_1 = arith.constant 0 : i32
    return %arg0, %c0_i32, %c0_i32_0 : i32, i32, i32
  }
}

</mosaic_0001>

<bundles_post_ra>
// kernel: unet_layer_forward.1
= control target key start
LH: loop header
LB: loop body
LE: loop exit
PB: predicated region body
PF: predicated region fallthrough
CT: control target
= control target key end

     0   :  { %s3299_s18 = smov 0   ;;  %s4192_s0 = inlined_call_operand.vmem [shape: f32[2,4,8,8,4], index: 0, kind: input, shape index: {}]   ;;  %s4193_s1 = inlined_call_operand.vmem [shape: bf16[9,4,8], index: 1, kind: input, shape index: {}]   ;;  %s4194_s2 = inlined_call_operand.vmem [shape: f32[1,8], index: 2, kind: input, shape index: {}]   ;;  %s4195_s3 = inlined_call_operand.vmem [shape: bf16[9,8,8], index: 3, kind: input, shape index: {}]   ;;  %s4196_s4 = inlined_call_operand.vmem [shape: f32[1,8], index: 4, kind: input, shape index: {}]   ;;  %s4197_s5 = inlined_call_operand.vmem [shape: f32[2,64,8], index: 5, kind: output, shape index: {}]  }
   0x1 LB: > { %s2708_s19 = sadd.s32 4294967295, %s3266_s18   ;;  %p2712_p0 = scmp.ge.s32.totalorder %s3266_s18, 1  ;;  %s3266_s18 = sphi %s3299_s18, %s15_s18  }
   0x2   : > { %p187_p1 = scmp.lt.s32.totalorder %s3266_s18, 3 }
   0x4   : > { %p188_p2 = pnand %p2712_p0, %p187_p1 }
   0x5   : > { %v2741_v0 = vld [vmem:[%s4193_s1 + $0x2] sm:$0x3] (!%p188_p2)  ;;  %vm438_vm0 = vcmask (!%p188_p2), 1041408   ;;  %p215_p3 = scmp.lt.s32.totalorder (!%p188_p2), %s2708_s19, 1  ;;  %vm226_vm1 = vcmask (!%p188_p2), 31744   ;;  %v3268_v2 = vmov (!%p188_p2), 0.0  }
   0x6   : > { %191 = sbr.rel (%p188_p2) target bundleno = 755 (0x2f3), region = 40  ;;  %3233 = vmatprep.subr.msk.bf16.mxu0 (!%p188_p2), %vm438_vm0, %v2741_v0  ;;  %v440_v1 = vsel (!%p188_p2), %vm438_vm0, %v2741_v0, 0  ;;  %227 = vst.msk [vmem:[#allocation2] sm:$0xff] (!%p188_p2), %vm226_vm1, %v3268_v2  ;;  %vm228_vm2 = vcmask (!%p188_p2), 25600   ;;  %vm233_vm3 = vcmask (!%p188_p2), 24576   ;;  %231 = vst.msk [vmem:[#allocation2 + $0x90] sm:$0xff] (!%p188_p2), %vm226_vm1, %v3268_v2 }
   0x7   : > { %v3319_v3 = vld [vmem:[%s4193_s1] sm:$0x3] (!%p188_p2)  ;;  %2926 = vmatpush3.bf16.msra.mxu0 (!%p188_p2), %v440_v1  ;;  %229 = vst.msk [vmem:[#allocation2 + $0x8] sm:$0x3] (!%p188_p2), %vm228_vm2, %v3268_v2  ;;  %232 = vst.msk [vmem:[#allocation2 + $0x98] sm:$0x3] (!%p188_p2), %vm228_vm2, %v3268_v2 }
   0x8   : > { %234 = vst.msk [vmem:[#allocation2] sm:$0x1] (!%p188_p2), %vm233_vm3, %v3268_v2  ;;  %235 = vst.msk [vmem:[#allocation2 + $0x10] sm:$0x1] (!%p188_p2), %vm233_vm3, %v3268_v2  ;;  %3234 = vmatprep.subr.msk.bf16.mxu0 (!%p188_p2), %vm438_vm0, %v3319_v3  ;;  %vm387_vm4 = vcmask (!%p188_p2), 1046528   ;;  %vm587_vm5 = vcmask (!%p188_p2), 1045504  }
   0x9   : > { %245 = vst.msk [vmem:[#allocation2 + $0x19] sm:$0x1] (!%p188_p2), %vm233_vm3, %v3268_v2  ;;  %236 = vst.msk [vmem:[#allocation2 + $0x20] sm:$0x1] (!%p188_p2), %vm233_vm3, %v3268_v2  ;;  %vm254_vm6 = vcmask (!%p188_p2), 64512   ;;  %vm256_vm7 = vcmask (!%p188_p2), 58368  }
   0xa   : > { %237 = vst.msk [vmem:[#allocation2 + $0x30] sm:$0x1] (!%p188_p2), %vm233_vm3, %v3268_v2  ;;  %238 = vst.msk [vmem:[#allocation2 + $0x40] sm:$0x1] (!%p188_p2), %vm233_vm3, %v3268_v2  ;;  %vm261_vm8 = vcmask (!%p188_p2), 57344   ;;  %vm1590_vm9 = vcmask (!%p188_p2), 1043456  }
   0xb   : > { %239 = vst.msk [vmem:[#allocation2 + $0x50] sm:$0x1] (!%p188_p2), %vm233_vm3, %v3268_v2  ;;  %240 = vst.msk [vmem:[#allocation2 + $0x60] sm:$0x1] (!%p188_p2), %vm233_vm3, %v3268_v2 }
   0xc   : > { %241 = vst.msk [vmem:[#allocation2 + $0x70] sm:$0x1] (!%p188_p2), %vm233_vm3, %v3268_v2  ;;  %242 = vst.msk [vmem:[#allocation2 + $0x80] sm:$0x1] (!%p188_p2), %vm233_vm3, %v3268_v2 }
   0xd   : > { %s4199_s19 = smov (!%p215_p3, %s2708_s19), 1  ;;  %246 = vst.msk [vmem:[#allocation2 + $0x29] sm:$0x1] %vm233_vm3, %v3268_v2  ;;  %247 = vst.msk [vmem:[#allocation2 + $0x39] sm:$0x1] %vm233_vm3, %v3268_v2 }
   0xe   : > { %248 = vst.msk [vmem:[#allocation2 + $0x49] sm:$0x1] %vm233_vm3, %v3268_v2  ;;  %249 = vst.msk [vmem:[#allocation2 + $0x59] sm:$0x1] %vm233_vm3, %v3268_v2  ;;  %s2833_s24 = sshll.u32 %s4199_s19, 8  ;;  %s2834_s16 = sshll.u32 %s4199_s19, 6 }
   0xf   : > { %250 = vst.msk [vmem:[#allocation2 + $0x69] sm:$0x1] %vm233_vm3, %v3268_v2  ;;  %251 = vst.msk [vmem:[#allocation2 + $0x79] sm:$0x1] %vm233_vm3, %v3268_v2  ;;  %s3371_s27 = scalar_lea.vmem %s4192_s0, %s2833_s24  ;;  %v3384_v20 = vld [vmem:[#allocation2] sm:$0xff]  ;;  %s224_s21 = scalar_lea.vmem %s4197_s5, %s2834_s16 }
  0x10   : > { %252 = vst.msk [vmem:[#allocation2 + $0x89] sm:$0x1] %vm233_vm3, %v3268_v2  ;;  %243 = vst.msk [vmem:[#allocation2 + $0x90] sm:$0x1] %vm233_vm3, %v3268_v2  ;;  %v282_v4 = vld [vmem:[%s3371_s27] sm:$0xff]  ;;  %v283_v9 = vld [vmem:[%s3371_s27 + $0x8] sm:$0xff] }
  0x11   : > { %244 = vst.msk [vmem:[#allocation2 + $0x9] sm:$0x1] %vm233_vm3, %v3268_v2  ;;  %253 = vst.msk [vmem:[#allocation2 + $0x99] sm:$0x1] %vm233_vm3, %v3268_v2  ;;  %v2717_v5 = vld [vmem:[%s3371_s27 + $0x40] sm:$0xff]  ;;  %v284_v10 = vld [vmem:[%s3371_s27 + $0x10] sm:$0xff] }
  0x12   : > { %v2725_v6 = vld [vmem:[%s3371_s27 + $0x80] sm:$0xff]  ;;  %v299_v7 = vmax.f32 %v282_v4, %v2717_v5  ;;  %v2718_v12 = vld [vmem:[%s3371_s27 + $0x48] sm:$0xff]  ;;  %v2719_v13 = vld [vmem:[%s3371_s27 + $0x50] sm:$0xff]  ;;  %v388_v44 = vrot.slane %v3384_v20, 1  ;;  %255 = vst.msk [vmem:[#allocation3] sm:$0xff] %vm254_vm6, %v3268_v2 }
  0x13   : > { %v2733_v8 = vld [vmem:[%s3371_s27 + $0xc0] sm:$0xff]  ;;  %v2726_v14 = vld [vmem:[%s3371_s27 + $0x88] sm:$0xff]  ;;  %v300_v15 = vmax.f32 %v283_v9, %v2718_v12  ;;  %v301_v16 = vmax.f32 %v284_v10, %v2719_v13  ;;  %v2727_v17 = vld [vmem:[%s3371_s27 + $0x90] sm:$0xff]  ;;  %259 = vst.msk [vmem:[#allocation3 + $0x90] sm:$0xff] %vm254_vm6, %v3268_v2 }
  0x14   : > { %v325_v11 = vmax.f32 %v2725_v6, %v2733_v8  ;;  %v2734_v18 = vld [vmem:[%s3371_s27 + $0xc8] sm:$0xff]  ;;  %v2735_v21 = vld [vmem:[%s3371_s27 + $0xd0] sm:$0xff]  ;;  %v285_v23 = vld [vmem:[%s3371_s27 + $0x18] sm:$0xff]  ;;  %257 = vst.msk [vmem:[#allocation3 + $0x8] sm:$0x3] %vm256_vm7, %v3268_v2 }
  0x15   : > { %v326_v22 = vmax.f32 %v2726_v14, %v2734_v18  ;;  %v327_v25 = vmax.f32 %v2727_v17, %v2735_v21  ;;  %v286_v26 = vld [vmem:[%s3371_s27 + $0x20] sm:$0xff]  ;;  %v2720_v27 = vld [vmem:[%s3371_s27 + $0x58] sm:$0xff]  ;;  %v287_v38 = vld [vmem:[%s3371_s27 + $0x28] sm:$0xff]  ;;  %260 = vst.msk [vmem:[#allocation3 + $0x98] sm:$0x3] %vm256_vm7, %v3268_v2 }
  0x16   : > { %v333_v19 = vmax.f32 %v299_v7, %v325_v11  ;;  %v2721_v28 = vld [vmem:[%s3371_s27 + $0x60] sm:$0xff]  ;;  %v302_v30 = vmax.f32 %v285_v23, %v2720_v27  ;;  %v2728_v32 = vld [vmem:[%s3371_s27 + $0x98] sm:$0xff]  ;;  %v288_v39 = vld [vmem:[%s3371_s27 + $0x30] sm:$0xff]  ;;  %262 = vst.msk [vmem:[#allocation3] sm:$0x1] %vm261_vm8, %v3268_v2 }
  0x17   : > { %v334_v29 = vmax.f32 %v300_v15, %v326_v22  ;;  %v303_v31 = vmax.f32 %v286_v26, %v2721_v28  ;;  %v2729_v33 = vld [vmem:[%s3371_s27 + $0xa0] sm:$0xff]  ;;  %v2736_v34 = vld [vmem:[%s3371_s27 + $0xd8] sm:$0xff]  ;;  %v335_v35 = vmax.f32 %v301_v16, %v327_v25  ;;  %v2722_v41 = vld [vmem:[%s3371_s27 + $0x68] sm:$0xff]  ;;  %v520_v28 = vsel %vm438_vm0, %v3319_v3, 0  ;;  %263 = vst.msk [vmem:[#allocation3 + $0x10] sm:$0x1] %vm261_vm8, %v3268_v2 }
  0x18   : > { %v3388_v24 = vld [vmem:[#allocation2 + $0x8] sm:$0x3]  ;;  %342 = vst.msk [vmem:[#allocation2 + $0x11] sm:$0xff] %vm226_vm1, %v333_v19  ;;  %v2737_v36 = vld [vmem:[%s3371_s27 + $0xe0] sm:$0xff]  ;;  %v328_v37 = vmax.f32 %v2728_v32, %v2736_v34  ;;  %v2723_v42 = vld [vmem:[%s3371_s27 + $0x70] sm:$0xff]  ;;  %v304_v46 = vmax.f32 %v287_v38, %v2722_v41 }
  0x19   : > { %343 = vst.msk [vmem:[#allocation2 + $0x21] sm:$0xff] %vm226_vm1, %v334_v29  ;;  %v329_v40 = vmax.f32 %v2729_v33, %v2737_v36  ;;  %v2730_v43 = vld [vmem:[%s3371_s27 + $0xa8] sm:$0xff]  ;;  %344 = vst.msk [vmem:[#allocation2 + $0x31] sm:$0xff] %vm226_vm1, %v335_v35  ;;  %v305_v47 = vmax.f32 %v288_v39, %v2723_v42  ;;  %v2731_v48 = vld [vmem:[%s3371_s27 + $0xb0] sm:$0xff]  ;;  %v389_v51 = vrot.slane %v3388_v24, 1 }
  0x1a   : > { %v336_v45 = vmax.f32 %v302_v30, %v328_v37  ;;  %v2738_v49 = vld [vmem:[%s3371_s27 + $0xe8] sm:$0xff]  ;;  %v2739_v50 = vld [vmem:[%s3371_s27 + $0xf0] sm:$0xff]  ;;  %v289_v55 = vld [vmem:[%s3371_s27 + $0x38] sm:$0xff]  ;;  %273 = vst.msk [vmem:[#allocation3 + $0x19] sm:$0x1] %vm261_vm8, %v3268_v2 }
  0x1b   : > { %v337_v52 = vmax.f32 %v303_v31, %v329_v40  ;;  %v330_v53 = vmax.f32 %v2730_v43, %v2738_v49  ;;  %v331_v54 = vmax.f32 %v2731_v48, %v2739_v50  ;;  %v2724_v56 = vld [vmem:[%s3371_s27 + $0x78] sm:$0xff]  ;;  %v390_v1 = vsel %vm387_vm4, %v388_v44, %v389_v51  ;;  %v2750_v31 = vld [vmem:[%s4193_s1 + $0x4] sm:$0x3]  ;;  %264 = vst.msk [vmem:[#allocation3 + $0x20] sm:$0x1] %vm261_vm8, %v3268_v2 }
  0x1c   : > { %v2732_v57 = vld [vmem:[%s3371_s27 + $0xb8] sm:$0xff]  ;;  %345 = vst.msk [vmem:[#allocation2 + $0x41] sm:$0xff] %vm226_vm1, %v336_v45  ;;  %v306_v58 = vmax.f32 %v289_v55, %v2724_v56  ;;  %v3526_v55 = vld [vmem:[%s4193_s1 + $0x6] sm:$0x3] }
  0x1d   : > { %v2740_v59 = vld [vmem:[%s3371_s27 + $0xf8] sm:$0xff]  ;;  %346 = vst.msk [vmem:[#allocation2 + $0x51] sm:$0xff] %vm226_vm1, %v337_v52  ;;  %v338_v60 = vmax.f32 %v304_v46, %v330_v53  ;;  %v339_v61 = vmax.f32 %v305_v47, %v331_v54  ;;  %v588_v46 = vrot.slane %v3384_v20, 2  ;;  %v589_v47 = vrot.slane %v3388_v24, 2 }
  0x1e   : > { %v332_v62 = vmax.f32 %v2732_v57, %v2740_v59  ;;  %v639_v54 = vsel %vm438_vm0, %v2750_v31, 0  ;;  %265 = vst.msk [vmem:[#allocation3 + $0x30] sm:$0x1] %vm261_vm8, %v3268_v2  ;;  %266 = vst.msk [vmem:[#allocation3 + $0x40] sm:$0x1] %vm261_vm8, %v3268_v2 }
  0x1f   : > { %v3416_v63 = vld [vmem:[#allocation2 + $0x10] sm:$0xff]  ;;  %v3418_v0 = vld [vmem:[#allocation2 + $0x18] sm:$0x3]  ;;  %347 = vst.msk [vmem:[#allocation2 + $0x61] sm:$0xff] %vm226_vm1, %v338_v60  ;;  %348 = vst.msk [vmem:[#allocation2 + $0x71] sm:$0xff] %vm226_vm1, %v339_v61  ;;  %v590_v51 = vsel %vm587_vm5, %v588_v46, %v589_v47 }
  0x20   : > { %v391_v4 = vrot.slane %v3416_v63, 1  ;;  %v392_v5 = vrot.slane %v3418_v0, 1  ;;  %v3425_v6 = vld [vmem:[#allocation2 + $0x20] sm:$0xff]  ;;  %v3427_v7 = vld [vmem:[#allocation2 + $0x28] sm:$0x3]  ;;  %v340_v8 = vmax.f32 %v306_v58, %v332_v62  ;;  %v3432_v10 = vld [vmem:[#allocation2 + $0x30] sm:$0xff]  ;;  %v366_v45 = vpack.c.bf16 %v3416_v63, %v3384_v20 }
  0x21   : > { %v3434_v11 = vld [vmem:[#allocation2 + $0x38] sm:$0x3]  ;;  %v3437_v12 = vrot.slane %v3425_v6, 1  ;;  %v395_v13 = vrot.slane %v3427_v7, 1  ;;  %v3441_v15 = vrot.slane %v3432_v10, 1  ;;  %v591_v48 = vrot.slane %v3416_v63, 2 }
  0x22   : > { %v393_v9 = vsel %vm387_vm4, %v391_v4, %v392_v5  ;;  %v398_v16 = vrot.slane %v3434_v11, 1  ;;  %349 = vst.msk [vmem:[#allocation2 + $0x81] sm:$0xff] %vm226_vm1, %v340_v8  ;;  %v592_v49 = vrot.slane %v3418_v0, 2  ;;  %v3508_v50 = vpack.c.bf16 %v3432_v10, %v3425_v6  ;;  %v1094_v56 = vld [vmem:[#allocation2 + $0x28] sm:$0x3] }
  0x23   : > { %v420_v14 = vpack.c.bf16 %v393_v9, %v390_v1  ;;  %v396_v17 = vsel %vm387_vm4, %v3437_v12, %v395_v13  ;;  %v3447_v18 = vld [vmem:[#allocation2 + $0x40] sm:$0xff]  ;;  %v3449_v19 = vld [vmem:[#allocation2 + $0x48] sm:$0x3]  ;;  %v3512_v52 = vrot.slane %v3425_v6, 2  ;;  %v595_v20 = vrot.slane %v3427_v7, 2 }
  0x24   : > { %v399_v21 = vsel %vm387_vm4, %v3441_v15, %v398_v16  ;;  %v3454_v22 = vld [vmem:[#allocation2 + $0x50] sm:$0xff]  ;;  %v3456_v23 = vld [vmem:[#allocation2 + $0x58] sm:$0x3]  ;;  %v3459_v25 = vrot.slane %v3447_v18, 1  ;;  %v401_v26 = vrot.slane %v3449_v19, 1  ;;  %v593_v53 = vsel %vm587_vm5, %v591_v48, %v592_v49 }
  0x25   : > { %2927 = vmatprep.mubr.msk.bf16.mxu0 %vm226_vm1, %v420_v14  ;;  %v421_v27 = vpack.c.bf16 %v399_v21, %v396_v17  ;;  %v3465_v29 = vrot.slane %v3454_v22, 1  ;;  %v404_v30 = vrot.slane %v3456_v23, 1  ;;  %v3517_v24 = vpack.c.bf16 %v3454_v22, %v3447_v18  ;;  %v1096_v57 = vld [vmem:[#allocation2 + $0x38] sm:$0x3]  ;;  %v1098_v58 = vld [vmem:[#allocation2 + $0x48] sm:$0x3] }
  0x26   : > { %v402_v32 = vsel %vm387_vm4, %v3459_v25, %v401_v26  ;;  %v3473_v33 = vld [vmem:[#allocation2 + $0x60] sm:$0xff]  ;;  %v3475_v34 = vld [vmem:[#allocation2 + $0x68] sm:$0x3]  ;;  %v3477_v35 = vld [vmem:[#allocation2 + $0x70] sm:$0xff]  ;;  %v3529_v60 = vrot.slane %v3432_v10, 2  ;;  %v598_v61 = vrot.slane %v3434_v11, 2  ;;  %v620_v62 = vpack.c.bf16 %v593_v53, %v590_v51 }
  0x27   : > { %2928 = vmatmul.mubr.msk.bf16.vlgmr.msra.gmra.mrb[0].mxu0 %vm226_vm1, %v421_v27  ;;  %v405_v3 = vsel %vm387_vm4, %v3465_v29, %v404_v30  ;;  %v3482_v36 = vld [vmem:[#allocation2 + $0x78] sm:$0x3]  ;;  %v3485_v37 = vrot.slane %v3473_v33, 1  ;;  %v407_v38 = vrot.slane %v3475_v34, 1  ;;  %v3489_v39 = vrot.slane %v3477_v35, 1 }
  0x28   : > { %2936 = vmatpush3.bf16.msra.mxu0 %v520_v28  ;;  %v422_v40 = vpack.c.bf16 %v405_v3, %v402_v32  ;;  %v410_v41 = vrot.slane %v3482_v36, 1  ;;  %v1100_v59 = vld [vmem:[#allocation2 + $0x58] sm:$0x3]  ;;  %v1102_v0 = vld [vmem:[#allocation2 + $0x68] sm:$0x3]  ;;  %v3538_v5 = vpack.c.bf16 %v3477_v35, %v3473_v33  ;;  %v596_v7 = vsel %vm587_vm5, %v3512_v52, %v595_v20 }
  0x29   : > { %v408_v42 = vsel %vm387_vm4, %v3485_v37, %v407_v38  ;;  %3235 = vmatprep.subr.msk.bf16.mxu0 %vm438_vm0, %v2750_v31  ;;  %v1104_v1 = vld [vmem:[#allocation2 + $0x78] sm:$0x3]  ;;  %v3543_v8 = vrot.slane %v3447_v18, 2  ;;  %v1220_v9 = vrot.slane %v1094_v56, 1  ;;  %v601_v11 = vrot.slane %v3449_v19, 2 }
  0x2a   : > { %2931 = vmatprep.mubr.msk.bf16.mxu0 %vm226_vm1, %v422_v40  ;;  %v411_v43 = vsel %vm387_vm4, %v3489_v39, %v410_v41  ;;  %v1223_v13 = vrot.slane %v1096_v57, 1  ;;  %v1226_v14 = vrot.slane %v1098_v58, 1  ;;  %v1229_v16 = vrot.slane %v1100_v59, 1  ;;  %267 = vst.msk [vmem:[#allocation3 + $0x50] sm:$0x1] %vm261_vm8, %v3268_v2 }
  0x2b   : > { %v423_v44 = vpack.c.bf16 %v411_v43, %v408_v42  ;;  %v3549_v17 = vrot.slane %v3454_v22, 2  ;;  %v3553_v21 = vsel %vm387_vm4, %v3437_v12, %v1220_v9  ;;  %v1232_v26 = vrot.slane %v1102_v0, 1  ;;  %268 = vst.msk [vmem:[#allocation3 + $0x60] sm:$0x1] %vm261_vm8, %v3268_v2  ;;  %269 = vst.msk [vmem:[#allocation3 + $0x70] sm:$0x1] %vm261_vm8, %v3268_v2 }
  0x2c   : > { %v1235_v27 = vrot.slane %v1104_v1, 1  ;;  %v604_v28 = vrot.slane %v3456_v23, 2  ;;  %v3558_v30 = vsel %vm387_vm4, %v3441_v15, %v1223_v13  ;;  %v3562_v19 = vsel %vm387_vm4, %v3459_v25, %v1226_v14  ;;  %270 = vst.msk [vmem:[#allocation3 + $0x80] sm:$0x1] %vm261_vm8, %v3268_v2  ;;  %271 = vst.msk [vmem:[#allocation3 + $0x90] sm:$0x1] %vm261_vm8, %v3268_v2 }
  0x2d   : > { %v3566_v31 = vsel %vm387_vm4, %v3465_v29, %v1229_v16  ;;  %v1251_v32 = vpack.c.bf16 %v3558_v30, %v3553_v21  ;;  %v3574_v23 = vsel %vm387_vm4, %v3485_v37, %v1232_v26  ;;  %v599_v40 = vsel %vm587_vm5, %v3529_v60, %v598_v61  ;;  %v2760_v26 = vld [vmem:[%s4193_s1 + $0x8] sm:$0x3]  ;;  %274 = vst.msk [vmem:[#allocation3 + $0x29] sm:$0x1] %vm261_vm8, %v3268_v2 }
  0x2e   : > { %v1252_v3 = vpack.c.bf16 %v3566_v31, %v3562_v19  ;;  %v3578_v38 = vsel %vm387_vm4, %v3489_v39, %v1235_v27  ;;  %v3583_v41 = vrot.slane %v3473_v33, 2  ;;  %v1346_v43 = vrot.slane %v1094_v56, 2  ;;  %v715_v27 = vld [vmem:[#allocation2 + $0x18] sm:$0x3]  ;;  %275 = vst.msk [vmem:[#allocation3 + $0x39] sm:$0x1] %vm261_vm8, %v3268_v2 }
  0x2f   : > { %2932 = vmatmul.mubr.msk.bf16.gmra.mrb[4].mxu0 %vm226_vm1, %v423_v44  ;;  %v1253_v42 = vpack.c.bf16 %v3578_v38, %v3574_v23  ;;  %v602_v44 = vsel %vm587_vm5, %v3543_v8, %v601_v11  ;;  %v1352_v46 = vrot.slane %v1098_v58, 2  ;;  %v1355_v47 = vrot.slane %v1100_v59, 2  ;;  %276 = vst.msk [vmem:[#allocation3 + $0x49] sm:$0x1] %vm261_vm8, %v3268_v2  ;;  %277 = vst.msk [vmem:[#allocation3 + $0x59] sm:$0x1] %vm261_vm8, %v3268_v2 }
  0x30   : > { %2937 = vmatprep.mubr.msk.bf16.mxu0 %vm226_vm1, %v366_v45  ;;  %v1349_v45 = vrot.slane %v1096_v57, 2  ;;  %v3592_v49 = vrot.slane %v3477_v35, 2  ;;  %v3596_v51 = vsel %vm587_vm5, %v3512_v52, %v1346_v43  ;;  %v1358_v20 = vrot.slane %v1102_v0, 2  ;;  %278 = vst.msk [vmem:[#allocation3 + $0x69] sm:$0x1] %vm261_vm8, %v3268_v2 }
  0x31   : > { %v1361_v53 = vrot.slane %v1104_v1, 2  ;;  %v3607_v57 = vsel %vm587_vm5, %v3543_v8, %v1352_v46  ;;  %v3611_v58 = vsel %vm587_vm5, %v3549_v17, %v1355_v47  ;;  %v621_v9 = vpack.c.bf16 %v599_v40, %v596_v7  ;;  %v3659_v47 = vld [vmem:[#allocation2 + $0x80] sm:$0xff]  ;;  %279 = vst.msk [vmem:[#allocation3 + $0x79] sm:$0x1] %vm261_vm8, %v3268_v2  ;;  %280 = vst.msk [vmem:[#allocation3 + $0x89] sm:$0x1] %vm261_vm8, %v3268_v2 }
  0x32   : > { %v3603_v56 = vsel %vm587_vm5, %v3529_v60, %v1349_v45  ;;  %v1378_v61 = vpack.c.bf16 %v3611_v58, %v3607_v57  ;;  %v607_v13 = vrot.slane %v3475_v34, 2  ;;  %v610_v14 = vrot.slane %v3482_v36, 2  ;;  %272 = vst.msk [vmem:[#allocation3 + $0x9] sm:$0x1] %vm261_vm8, %v3268_v2  ;;  %281 = vst.msk [vmem:[#allocation3 + $0x99] sm:$0x1] %vm261_vm8, %v3268_v2 }
  0x33   : > { %v1377_v59 = vpack.c.bf16 %v3603_v56, %v3596_v51  ;;  %v3623_v0 = vsel %vm587_vm5, %v3592_v49, %v1361_v53  ;;  %v749_v16 = vsel %vm438_vm0, %v3526_v55, 0  ;;  %v731_v40 = vpack.c.bf16 %v3447_v18, %v3432_v10  ;;  %v725_v53 = vld [vmem:[#allocation2 + $0x68] sm:$0x3]  ;;  %v1523_v56 = vld [vmem:[%s4195_s3] sm:$0xf] }
  0x34   : > { %v608_v7 = vsel %vm587_vm5, %v3583_v41, %v607_v13  ;;  %v611_v34 = vsel %vm587_vm5, %v3592_v49, %v610_v14  ;;  %v732_v43 = vpack.c.bf16 %v3473_v33, %v3454_v22  ;;  %v841_v45 = vrot.slane %v715_v27, 1  ;;  %v719_v22 = vld [vmem:[#allocation2 + $0x38] sm:$0x3]  ;;  %v721_v33 = vld [vmem:[#allocation2 + $0x48] sm:$0x3] }
  0x35   : > { %v623_v36 = vpack.c.bf16 %v611_v34, %v608_v7  ;;  %v850_v13 = vrot.slane %v721_v33, 1  ;;  %v727_v7 = vld [vmem:[#allocation2 + $0x78] sm:$0x3]  ;;  %v729_v34 = vld [vmem:[#allocation2 + $0x88] sm:$0x3] }
  0x36   : > { %v842_v10 = vsel %vm387_vm4, %v391_v4, %v841_v45  ;;  %v2785_v2 = vld [vmem:[%s4194_s2] ss:$0 sm:$0xff] }
  0x37   : > { %2938 = vmatmul.mubr.msk.bf16.vlgmr.msra.gmra.mrb[0].mxu0 %vm226_vm1, %v3508_v50 }
  0x38   : > { %2946 = vmatpush3.bf16.msra.mxu0 %v639_v54  ;;  %2941 = vmatprep.mubr.msk.bf16.mxu0 %vm226_vm1, %v3517_v24  ;;  %v605_v54 = vsel %vm587_vm5, %v3549_v17, %v604_v28  ;;  %v717_v28 = vld [vmem:[#allocation2 + $0x28] sm:$0x3] }
  0x39   : > { %3236 = vmatprep.subr.msk.bf16.mxu0 %vm438_vm0, %v3526_v55  ;;  %v622_v11 = vpack.c.bf16 %v605_v54, %v602_v44  ;;  %v730_v55 = vpack.c.bf16 %v3425_v6, %v3416_v63  ;;  %v891_v44 = vsel %vm438_vm0, %v2760_v26, 0  ;;  %v844_v46 = vrot.slane %v717_v28, 1  ;;  %v2765_v6 = vld [vmem:[%s4193_s1 + $0xa] sm:$0x3] }
  0x3a   : > { %v733_v54 = vpack.c.bf16 %v3659_v47, %v3477_v35  ;;  %v1017_v45 = vsel %vm438_vm0, %v2765_v6, 0 }
  0x3b   : > { %v845_v18 = vsel %vm387_vm4, %v3437_v12, %v844_v46  ;;  %v851_v12 = vsel %vm387_vm4, %v3459_v25, %v850_v13  ;;  %v970_v46 = vrot.slane %v717_v28, 2  ;;  %v2770_v25 = vld [vmem:[%s4193_s1 + $0xc] sm:$0x3]  ;;  %v988_v13 = vrot.slane %v729_v34, 2 }
  0x3d   : > { %v971_v28 = vsel %vm587_vm5, %v3512_v52, %v970_v46 }
  0x3f   : > { %2942 = vmatmul.mubr.msk.bf16.gmra.mrb[4].mxu0 %vm226_vm1, %v3538_v5 }
  0x40   : > { %2947 = vmatprep.mubr.msk.bf16.mxu0 %vm226_vm1, %v620_v62  ;;  %v3619_v62 = vsel %vm587_vm5, %v3583_v41, %v1358_v20  ;;  %v723_v20 = vld [vmem:[#allocation2 + $0x58] sm:$0x3] }
  0x41   : > { %v1379_v1 = vpack.c.bf16 %v3623_v0, %v3619_v62  ;;  %v853_v14 = vrot.slane %v723_v20, 1 }
  0x47   : > { %2948 = vmatmul.mubr.msk.bf16.vlgmr.msra.gmra.mrb[0].mxu0 %vm226_vm1, %v621_v9  ;;  %v872_v9 = vpack.c.bf16 %v845_v18, %v842_v10  ;;  %v973_v18 = vrot.slane %v719_v22, 2 }
  0x48   : > { %2956 = vmatpush3.bf16.msra.mxu0 %v749_v16  ;;  %2951 = vmatprep.mubr.msk.bf16.mxu0 %vm226_vm1, %v622_v11  ;;  %v847_v11 = vrot.slane %v719_v22, 1  ;;  %v856_v16 = vrot.slane %v725_v53, 1 }
  0x49   : > { %3237 = vmatprep.subr.msk.bf16.mxu0 %vm438_vm0, %v2760_v26  ;;  %v854_v26 = vsel %vm387_vm4, %v3465_v29, %v853_v14  ;;  %v974_v63 = vsel %vm587_vm5, %v3529_v60, %v973_v18  ;;  %v1128_v14 = vsel %vm438_vm0, %v2770_v25, 0  ;;  %v2775_v60 = vld [vmem:[%s4193_s1 + $0xe] sm:$0x3] }
  0x4a   : > { %v848_v4 = vsel %vm387_vm4, %v3441_v15, %v847_v11  ;;  %v857_v35 = vsel %vm387_vm4, %v3485_v37, %v856_v16  ;;  %v967_v15 = vrot.slane %v715_v27, 2  ;;  %v982_v11 = vrot.slane %v725_v53, 2 }
  0x4b   : > { %v985_v53 = vrot.slane %v727_v7, 2  ;;  %v1270_v16 = vsel %vm438_vm0, %v2775_v60, 0 }
  0x4c   : > { %v968_v27 = vsel %vm587_vm5, %v591_v48, %v967_v15  ;;  %v983_v52 = vsel %vm587_vm5, %v3583_v41, %v982_v11 }
  0x4d   : > { %v998_v10 = vpack.c.bf16 %v971_v28, %v968_v27 }
  0x4f   : > { %2952 = vmatmul.mubr.msk.bf16.gmra.mrb[4].mxu0 %vm226_vm1, %v623_v36  ;;  %v873_v36 = vpack.c.bf16 %v851_v12, %v848_v4  ;;  %v2780_v4 = vld [vmem:[%s4193_s1 + $0x10] sm:$0x3] }
  0x50   : > { %2957 = vmatprep.mubr.msk.bf16.mxu0 %vm226_vm1, %v730_v55  ;;  %v861_v55 = vrot.slane %v3659_v47, 1 }
  0x57   : > { %2958 = vmatmul.mubr.msk.bf16.vlgmr.msra.gmra.mrb[0].mxu0 %vm226_vm1, %v731_v40  ;;  %v874_v40 = vpack.c.bf16 %v857_v35, %v854_v26  ;;  %v1108_v26 = vld [vmem:[#allocation2 + $0x98] sm:$0x3] }
  0x58   : > { %2966 = vmatpush3.bf16.msra.mxu0 %v891_v44  ;;  %2961 = vmatprep.mubr.msk.bf16.mxu0 %vm226_vm1, %v732_v43  ;;  %v859_v43 = vrot.slane %v727_v7, 1  ;;  %v862_v44 = vrot.slane %v729_v34, 1  ;;  %v1241_v7 = vrot.slane %v1108_v26, 1  ;;  %v1396_v34 = vsel %vm438_vm0, %v2780_v4, 0 }
  0x59   : > { %3238 = vmatprep.subr.msk.bf16.mxu0 %vm438_vm0, %v2765_v6 }
  0x5a   : > { %v860_v29 = vsel %vm387_vm4, %v3489_v39, %v859_v43  ;;  %v863_v37 = vsel %vm387_vm4, %v861_v55, %v862_v44  ;;  %v3821_v44 = vld [vmem:[#allocation3] sm:$0xff] }
  0x5b   : > { %v875_v6 = vpack.c.bf16 %v863_v37, %v860_v29  ;;  %v1540_v29 = vrot.slane %v3821_v44, 1 }
  0x5f   : > { %2962 = vmatmul.mubr.msk.bf16.gmra.mrb[4].mxu0 %vm226_vm1, %v733_v54  ;;  %v976_v54 = vrot.slane %v721_v33, 2  ;;  %v987_v33 = vrot.slane %v3659_v47, 2 }
  0x60   : > { %2967 = vmatprep.mubr.msk.bf16.mxu0 %vm226_vm1, %v872_v9  ;;  %v979_v9 = vrot.slane %v723_v20, 2 }
  0x61   : > { %v977_v39 = vsel %vm587_vm5, %v3543_v8, %v976_v54  ;;  %v986_v8 = vsel %vm587_vm5, %v3592_v49, %v985_v53  ;;  %v1107_v49 = vld [vmem:[#allocation2 + $0x90] sm:$0xff] }
  0x62   : > { %v980_v48 = vsel %vm587_vm5, %v3549_v17, %v979_v9  ;;  %v999_v22 = vpack.c.bf16 %v977_v39, %v974_v63  ;;  %v989_v17 = vsel %vm587_vm5, %v987_v33, %v988_v13  ;;  %v1112_v12 = vpack.c.bf16 %v1107_v49, %v3659_v47 }
  0x63   : > { %v1000_v20 = vpack.c.bf16 %v983_v52, %v980_v48  ;;  %v1001_v41 = vpack.c.bf16 %v989_v17, %v986_v8  ;;  %v1240_v35 = vrot.slane %v1107_v49, 1  ;;  %v1366_v19 = vrot.slane %v1107_v49, 2 }
  0x65   : > { %v1242_v21 = vsel %vm387_vm4, %v1240_v35, %v1241_v7  ;;  %v2795_v7 = vld [vmem:[%s4195_s3 + $0x8] sm:$0xf] }
  0x67   : > { %2968 = vmatmul.mubr.msk.bf16.vlgmr.msra.gmra.mrb[0].mxu0 %vm226_vm1, %v873_v36 }
  0x68   : > { %2976 = vmatpush3.bf16.msra.mxu0 %v1017_v45  ;;  %2971 = vmatprep.mubr.msk.bf16.mxu0 %vm226_vm1, %v874_v40  ;;  %v3823_v45 = vld [vmem:[#allocation3 + $0x8] sm:$0x3] }
  0x69   : > { %3239 = vmatprep.subr.msk.bf16.mxu0 %vm438_vm0, %v2770_v25  ;;  %v1541_v37 = vrot.slane %v3823_v45, 1 }
  0x6f   : > { %2972 = vmatmul.mubr.msk.bf16.gmra.mrb[4].mxu0 %vm226_vm1, %v875_v6 }
  0x70   : > { %2977 = vmatprep.mubr.msk.bf16.mxu0 %vm226_vm1, %v998_v10 }
  0x77   : > { %2978 = vmatmul.mubr.msk.bf16.vlgmr.msra.gmra.mrb[0].mxu0 %vm226_vm1, %v999_v22  ;;  %v1542_v22 = vsel %vm387_vm4, %v1540_v29, %v1541_v37 }
  0x78   : > { %2986 = vmatpush3.bf16.msra.mxu0 %v1128_v14  ;;  %2981 = vmatprep.mubr.msk.bf16.mxu0 %vm226_vm1, %v1000_v20 }
  0x79   : > { %3240 = vmatprep.subr.msk.bf16.mxu0 %vm438_vm0, %v2775_v60 }
  0x7f   : > { %2982 = vmatmul.mubr.msk.bf16.gmra.mrb[4].mxu0 %vm226_vm1, %v1001_v41 }
  0x80   : > { %2987 = vmatprep.mubr.msk.bf16.mxu0 %vm226_vm1, %v3508_v50  ;;  %v1106_v50 = vld [vmem:[#allocation2 + $0x88] sm:$0x3] }
  0x81   : > { %v1364_v31 = vrot.slane %v1106_v50, 2 }
  0x87   : > { %2988 = vmatmul.mubr.msk.bf16.vlgmr.msra.gmra.mrb[0].mxu0 %vm226_vm1, %v3517_v24  ;;  %v1238_v24 = vrot.slane %v1106_v50, 1 }
  0x88   : > { %2996 = vmatpush3.bf16.msra.mxu0 %v1270_v16  ;;  %2991 = vmatprep.mubr.msk.bf16.mxu0 %vm226_vm1, %v3538_v5 }
  0x89   : > { %3241 = vmatprep.subr.msk.bf16.mxu0 %vm438_vm0, %v2780_v4  ;;  %v1239_v5 = vsel %vm387_vm4, %v861_v55, %v1238_v24  ;;  %v1672_v24 = vsel %vm1590_vm9, %v1523_v56, 0 }
  0x8a   : > { %v1254_v30 = vpack.c.bf16 %v1242_v21, %v1239_v5 }
  0x8f   : > { %2992 = vmatmul.mubr.msk.bf16.gmra.mrb[4].mxu0 %vm226_vm1, %v1112_v12 }
  0x90   : > { %2997 = vmatprep.mubr.msk.bf16.mxu0 %vm226_vm1, %v1251_v32  ;;  %v1367_v32 = vrot.slane %v1108_v26, 2 }
  0x92   : > { %v1368_v23 = vsel %vm587_vm5, %v1366_v19, %v1367_v32 }
  0x97   : > { %2998 = vmatmul.mubr.msk.bf16.vlgmr.msra.gmra.mrb[0].mxu0 %vm226_vm1, %v1252_v3  ;;  %v1365_v3 = vsel %vm587_vm5, %v987_v33, %v1364_v31 }
  0x98   : > { %3006 = vmatpush3.bf16.msra.mxu0 %v1396_v34  ;;  %3001 = vmatprep.mubr.msk.bf16.mxu0 %vm226_vm1, %v1253_v42  ;;  %v1380_v38 = vpack.c.bf16 %v1368_v23, %v1365_v3  ;;  %v2786_v42 = vld [vmem:[%s4195_s3 + $0x4] sm:$0xf] }
  0x99   : > { %3242 = vmatprep.subr.msk.bf16.mxu1 %vm1590_vm9, %v2786_v42  ;;  %v1592_v51 = vsel %vm1590_vm9, %v2786_v42, 0 }
  0x9a   : > { %3016 = vmatpush3.bf16.msra.mxu1 %v1592_v51 }
  0x9b   : > { %3243 = vmatprep.subr.msk.bf16.mxu1 %vm1590_vm9, %v1523_v56 }
  0x9f   : > { %3002 = vmatmul.mubr.msk.bf16.gmra.mrb[4].mxu0 %vm226_vm1, %v1254_v30 }
  0xa0   : > { %3007 = vmatprep.mubr.msk.bf16.mxu0 %vm226_vm1, %v1377_v59 }
  0xa7   : > { %3008 = vmatmul.mubr.msk.bf16.vlgmr.msra.gmra.mrb[0].mxu0 %vm226_vm1, %v1378_v61 }
  0xa8   : > { %3011 = vmatprep.mubr.msk.bf16.mxu0 %vm226_vm1, %v1379_v1 }
  0xaf   : > { %3012 = vmatmul.mubr.msk.bf16.gmra.mrb[4].mxu0 %vm226_vm1, %v1380_v38 }
 0x17a   : > { %v3009_v57 = vpop.f32.mrb[0].mxu0 }
 0x17b   : > { %v1480_v58 = vadd.f32 %v3009_v57, %v2785_v2  ;;  %v1432_v59 = vpop.f32.mrb[1].mxu0 }
 0x17c   : > { %v1478_v61 = vadd.f32 %v2785_v2, %v1432_v59  ;;  %v3010_v62 = vpop.f32.mrb[2].mxu0 }
 0x17d   : > { %v1488_v0 = vmax.f32 %v1480_v58, 0.0  ;;  %v1481_v1 = vadd.f32 %v3010_v62, %v2785_v2  ;;  %v1435_v47 = vpop.f32.mrb[3].mxu0 }
 0x17e   : > { %v1486_v36 = vmax.f32 %v1478_v61, 0.0  ;;  %v1479_v55 = vadd.f32 %v2785_v2, %v1435_v47  ;;  %v1739_v47 = vrot.slane %v3821_v44, 2 }
 0x17f   : > { %1497 = vst.msk [vmem:[#allocation3 + $0x31] sm:$0xff] %vm254_vm6, %v1488_v0  ;;  %v1489_v40 = vmax.f32 %v1481_v1, 0.0 }
 0x180   : > { %1495 = vst.msk [vmem:[#allocation3 + $0x11] sm:$0xff] %vm254_vm6, %v1486_v36  ;;  %v1487_v43 = vmax.f32 %v1479_v55, 0.0  ;;  %v1740_v36 = vrot.slane %v3823_v45, 2 }
 0x181   : > { %1498 = vst.msk [vmem:[#allocation3 + $0x41] sm:$0xff] %vm254_vm6, %v1489_v40 }
 0x182   : > { %1496 = vst.msk [vmem:[#allocation3 + $0x21] sm:$0xff] %vm254_vm6, %v1487_v43  ;;  %v3013_v15 = vpop.f32.mrb[4].mxu0  ;;  %v3922_v43 = vld [vmem:[%s4195_s3 + $0xc] sm:$0xf]  ;;  %v1741_v37 = vsel %vm587_vm5, %v1739_v47, %v1740_v36 }
 0x183   : > { %v1484_v46 = vadd.f32 %v3013_v15, %v2785_v2  ;;  %v1448_v25 = vpop.f32.mrb[5].mxu0 }
 0x184   : > { %v1482_v27 = vadd.f32 %v2785_v2, %v1448_v25  ;;  %v3014_v28 = vpop.f32.mrb[6].mxu0 }
 0x185   : > { %v1492_v6 = vmax.f32 %v1484_v46, 0.0  ;;  %v1485_v10 = vadd.f32 %v3014_v28, %v2785_v2  ;;  %v1451_v18 = vpop.f32.mrb[7].mxu0 }
 0x186   : > { %v1490_v54 = vmax.f32 %v1482_v27, 0.0  ;;  %v1483_v9 = vadd.f32 %v2785_v2, %v1451_v18  ;;  %v3829_v11 = vld [vmem:[#allocation3 + $0x30] sm:$0xff]  ;;  %v3831_v63 = vld [vmem:[#allocation3 + $0x38] sm:$0x3] }
 0x187   : > { %1501 = vst.msk [vmem:[#allocation3 + $0x71] sm:$0xff] %vm254_vm6, %v1492_v6  ;;  %v1493_v39 = vmax.f32 %v1485_v10, 0.0  ;;  %v3834_v48 = vld [vmem:[#allocation3 + $0x10] sm:$0xff]  ;;  %v3836_v52 = vld [vmem:[#allocation3 + $0x18] sm:$0x3]  ;;  %v3840_v33 = vrot.slane %v3829_v11, 1 }
 0x188   : > { %1499 = vst.msk [vmem:[#allocation3 + $0x51] sm:$0xff] %vm254_vm6, %v1490_v54  ;;  %v1491_v20 = vmax.f32 %v1483_v9, 0.0  ;;  %v1543_v53 = vrot.slane %v3834_v48, 1  ;;  %v1544_v13 = vrot.slane %v3836_v52, 1  ;;  %v1550_v14 = vrot.slane %v3831_v63, 1  ;;  %v3859_v49 = vld [vmem:[#allocation3 + $0x40] sm:$0xff] }
 0x189   : > { %1502 = vst.msk [vmem:[#allocation3 + $0x81] sm:$0xff] %vm254_vm6, %v1493_v39  ;;  %v3847_v60 = vld [vmem:[#allocation3 + $0x20] sm:$0xff]  ;;  %v3849_v8 = vld [vmem:[#allocation3 + $0x28] sm:$0x3]  ;;  %v3873_v34 = vrot.slane %v3859_v49, 1  ;;  %v1519_v1 = vpack.c.bf16 %v3834_v48, %v3821_v44  ;;  %v1742_v55 = vrot.slane %v3834_v48, 2 }
 0x18a   : > { %1500 = vst.msk [vmem:[#allocation3 + $0x61] sm:$0xff] %vm254_vm6, %v1491_v20  ;;  %v1545_v17 = vsel %vm387_vm4, %v1543_v53, %v1544_v13  ;;  %v3856_v41 = vrot.slane %v3847_v60, 1  ;;  %v1547_v16 = vrot.slane %v3849_v8, 1  ;;  %v3861_v12 = vld [vmem:[#allocation3 + $0x48] sm:$0x3]  ;;  %v1551_v26 = vsel %vm387_vm4, %v3840_v33, %v1550_v14 }
 0x18b   : > { %v1572_v4 = vpack.c.bf16 %v1545_v17, %v1542_v22  ;;  %v1553_v5 = vrot.slane %v3861_v12, 1  ;;  %v1743_v40 = vrot.slane %v3836_v52, 2  ;;  %v3925_v15 = vrot.slane %v3829_v11, 2  ;;  %v2245_v25 = vld [vmem:[#allocation3 + $0x28] sm:$0x3] }
 0x18c   : > { %v1548_v50 = vsel %vm387_vm4, %v3856_v41, %v1547_v16  ;;  %v3929_v46 = vpack.c.bf16 %v3829_v11, %v3847_v60  ;;  %v1790_v44 = vsel %vm1590_vm9, %v2795_v7, 0  ;;  %v2247_v45 = vld [vmem:[#allocation3 + $0x38] sm:$0x3]  ;;  %v2249_v27 = vld [vmem:[#allocation3 + $0x48] sm:$0x3]  ;;  %v3938_v10 = vrot.slane %v3847_v60, 2 }
 0x18d   : > { %3017 = vmatprep.mubr.msk.bf16.mxu1 %vm254_vm6, %v1572_v4  ;;  %v1573_v35 = vpack.c.bf16 %v1551_v26, %v1548_v50  ;;  %v1554_v56 = vsel %vm387_vm4, %v3873_v34, %v1553_v5  ;;  %v1746_v18 = vrot.slane %v3849_v8, 2  ;;  %v1749_v54 = vrot.slane %v3831_v63, 2 }
 0x18e   : > { %v3876_v21 = vld [vmem:[#allocation3 + $0x70] sm:$0xff]  ;;  %v3878_v30 = vld [vmem:[#allocation3 + $0x78] sm:$0x3]  ;;  %v1744_v9 = vsel %vm587_vm5, %v1742_v55, %v1743_v40  ;;  %v3950_v52 = vrot.slane %v3859_v49, 2  ;;  %v2371_v20 = vrot.slane %v2245_v25, 1  ;;  %v2374_v63 = vrot.slane %v2247_v45, 1 }
 0x18f   : > { %3018 = vmatmul.mubr.msk.bf16.vlgmr.msra.gmra.mrb[0].mxu1 %vm254_vm6, %v1573_v35  ;;  %v3881_v19 = vld [vmem:[#allocation3 + $0x50] sm:$0xff]  ;;  %v3883_v31 = vld [vmem:[#allocation3 + $0x58] sm:$0x3]  ;;  %v3890_v23 = vrot.slane %v3876_v21, 1  ;;  %v1562_v38 = vrot.slane %v3878_v30, 1  ;;  %v3953_v22 = vrot.slane %v3876_v21, 2 }
 0x190   : > { %3026 = vmatpush3.bf16.msra.mxu1 %v1672_v24  ;;  %v3886_v32 = vrot.slane %v3881_v19, 1  ;;  %v1556_v3 = vrot.slane %v3883_v31, 1  ;;  %v3934_v29 = vpack.c.bf16 %v3881_v19, %v3859_v49  ;;  %v2251_v28 = vld [vmem:[#allocation3 + $0x58] sm:$0x3]  ;;  %v3958_v13 = vrot.slane %v3881_v19, 2 }
 0x191   : > { %v3893_v42 = vld [vmem:[#allocation3 + $0x60] sm:$0xff]  ;;  %v3895_v51 = vld [vmem:[#allocation3 + $0x68] sm:$0x3]  ;;  %3244 = vmatprep.subr.msk.bf16.mxu1 %vm1590_vm9, %v2795_v7  ;;  %v1563_v62 = vsel %vm387_vm4, %v3890_v23, %v1562_v38  ;;  %v2255_v39 = vld [vmem:[#allocation3 + $0x78] sm:$0x3]  ;;  %v2377_v14 = vrot.slane %v2249_v27, 1  ;;  %v3966_v4 = vsel %vm387_vm4, %v3856_v41, %v2371_v20  ;;  %v3970_v50 = vsel %vm387_vm4, %v3840_v33, %v2374_v63 }
 0x192   : > { %v1557_v2 = vsel %vm387_vm4, %v3886_v32, %v1556_v3  ;;  %v3903_v57 = vrot.slane %v3893_v42, 1  ;;  %v1559_v58 = vrot.slane %v3895_v51, 1  ;;  %v2253_v6 = vld [vmem:[#allocation3 + $0x68] sm:$0x3]  ;;  %v2380_v8 = vrot.slane %v2251_v28, 1 }
 0x193   : > { %v1574_v59 = vpack.c.bf16 %v1557_v2, %v1554_v56  ;;  %v2383_v17 = vrot.slane %v2253_v6, 1  ;;  %v3962_v16 = vpack.c.bf16 %v3876_v21, %v3893_v42  ;;  %v2386_v26 = vrot.slane %v2255_v39, 1 }
 0x194   : > { %v1560_v61 = vsel %vm387_vm4, %v3903_v57, %v1559_v58  ;;  %v2402_v35 = vpack.c.bf16 %v3970_v50, %v3966_v4  ;;  %v3976_v24 = vsel %vm387_vm4, %v3873_v34, %v2377_v14  ;;  %v3980_v7 = vsel %vm387_vm4, %v3886_v32, %v2380_v8 }
 0x195   : > { %3021 = vmatprep.mubr.msk.bf16.mxu1 %vm254_vm6, %v1574_v59  ;;  %v1575_v0 = vpack.c.bf16 %v1563_v62, %v1560_v61  ;;  %v3984_v5 = vsel %vm387_vm4, %v3903_v57, %v2383_v17  ;;  %v3987_v3 = vrot.slane %v3893_v42, 2  ;;  %v2403_v38 = vpack.c.bf16 %v3980_v7, %v3976_v24 }
 0x196   : > { %v3993_v56 = vsel %vm387_vm4, %v3890_v23, %v2386_v26  ;;  %v2497_v2 = vrot.slane %v2245_v25, 2  ;;  %v2500_v59 = vrot.slane %v2247_v45, 2  ;;  %v2503_v61 = vrot.slane %v2249_v27, 2 }
 0x197   : > { %3022 = vmatmul.mubr.msk.bf16.gmra.mrb[4].mxu1 %vm254_vm6, %v1575_v0  ;;  %v2404_v58 = vpack.c.bf16 %v3993_v56, %v3984_v5  ;;  %v2506_v62 = vrot.slane %v2251_v28, 2  ;;  %v1771_v0 = vpack.c.bf16 %v1744_v9, %v1741_v37  ;;  %v2509_v47 = vrot.slane %v2253_v6, 2 }
 0x198   : > { %3027 = vmatprep.mubr.msk.bf16.mxu1 %vm254_vm6, %v1519_v1  ;;  %v3999_v1 = vsel %vm587_vm5, %v3938_v10, %v2497_v2  ;;  %v2512_v36 = vrot.slane %v2255_v39, 2  ;;  %v1755_v40 = vrot.slane %v3883_v31, 2  ;;  %v4010_v25 = vsel %vm587_vm5, %v3950_v52, %v2503_v61  ;;  %v1868_v61 = vld [vmem:[#allocation3 + $0x28] sm:$0x3] }
 0x199   : > { %v4014_v45 = vsel %vm587_vm5, %v3958_v13, %v2506_v62  ;;  %v4023_v27 = vsel %vm587_vm5, %v3987_v3, %v2509_v47  ;;  %v1752_v6 = vrot.slane %v3861_v12, 2  ;;  %v1747_v39 = vsel %vm587_vm5, %v3938_v10, %v1746_v18  ;;  %v2805_v18 = vld [vmem:[%s4195_s3 + $0x10] sm:$0xf]  ;;  %v1866_v47 = vld [vmem:[#allocation3 + $0x18] sm:$0x3] }
 0x19a   : > { %v2529_v31 = vpack.c.bf16 %v4014_v45, %v4010_v25  ;;  %v4027_v28 = vsel %vm587_vm5, %v3953_v22, %v2512_v36  ;;  %v1756_v20 = vsel %vm587_vm5, %v3958_v13, %v1755_v40  ;;  %v1750_v63 = vsel %vm587_vm5, %v3925_v15, %v1749_v54  ;;  %v2810_v36 = vld [vmem:[%s4195_s3 + $0x14] sm:$0xf] }
 0x19b   : > { %v2530_v9 = vpack.c.bf16 %v4027_v28, %v4023_v27  ;;  %v1772_v14 = vpack.c.bf16 %v1750_v63, %v1747_v39  ;;  %v1900_v8 = vsel %vm1590_vm9, %v3922_v43, 0  ;;  %v1753_v17 = vsel %vm587_vm5, %v3950_v52, %v1752_v6 }
 0x19c   : > { %v1773_v12 = vpack.c.bf16 %v1756_v20, %v1753_v17  ;;  %v1758_v26 = vrot.slane %v3895_v51, 2  ;;  %v1761_v54 = vrot.slane %v3878_v30, 2  ;;  %v1882_v30 = vpack.c.bf16 %v3859_v49, %v3829_v11  ;;  %v4069_v11 = vld [vmem:[#allocation3 + $0x80] sm:$0xff]  ;;  %v1870_v20 = vld [vmem:[#allocation3 + $0x38] sm:$0x3] }
 0x19d   : > { %v2042_v62 = vsel %vm1590_vm9, %v2805_v18, 0  ;;  %v1992_v40 = vrot.slane %v1866_v47, 1  ;;  %v1884_v6 = vpack.c.bf16 %v4069_v11, %v3876_v21 }
 0x19e   : > { %v1762_v2 = vsel %vm587_vm5, %v3953_v22, %v1761_v54 }
 0x19f   : > { %3028 = vmatmul.mubr.msk.bf16.vlgmr.msra.gmra.mrb[0].mxu1 %vm254_vm6, %v3929_v46  ;;  %v1993_v39 = vsel %vm387_vm4, %v1543_v53, %v1992_v40 }
 0x1a0   : > { %3036 = vmatpush3.bf16.msra.mxu1 %v1790_v44  ;;  %3031 = vmatprep.mubr.msk.bf16.mxu1 %vm254_vm6, %v3934_v29  ;;  %v4006_v44 = vsel %vm587_vm5, %v3925_v15, %v2500_v59  ;;  %v1881_v59 = vpack.c.bf16 %v3847_v60, %v3834_v48  ;;  %v1995_v60 = vrot.slane %v1868_v61, 1 }
 0x1a1   : > { %3245 = vmatprep.subr.msk.bf16.mxu1 %vm1590_vm9, %v3922_v43  ;;  %v2528_v37 = vpack.c.bf16 %v4006_v44, %v3999_v1  ;;  %v1759_v43 = vsel %vm587_vm5, %v3987_v3, %v1758_v26 }
 0x1a2   : > { %v1774_v51 = vpack.c.bf16 %v1762_v2, %v1759_v43  ;;  %v1996_v49 = vsel %vm387_vm4, %v3856_v41, %v1995_v60  ;;  %v2168_v43 = vsel %vm1590_vm9, %v2810_v36, 0 }
 0x1a3   : > { %v2023_v63 = vpack.c.bf16 %v1996_v49, %v1993_v39  ;;  %v2124_v39 = vrot.slane %v1870_v20, 2 }
 0x1a5   : > { %v2125_v48 = vsel %vm587_vm5, %v3925_v15, %v2124_v39 }
 0x1a7   : > { %3032 = vmatmul.mubr.msk.bf16.gmra.mrb[4].mxu1 %vm254_vm6, %v3962_v16 }
 0x1a8   : > { %3037 = vmatprep.mubr.msk.bf16.mxu1 %vm254_vm6, %v1771_v0  ;;  %v1883_v0 = vpack.c.bf16 %v3893_v42, %v3881_v19  ;;  %v1872_v19 = vld [vmem:[#allocation3 + $0x48] sm:$0x3] }
 0x1a9   : > { %v1876_v42 = vld [vmem:[#allocation3 + $0x68] sm:$0x3] }
 0x1aa   : > { %v2007_v17 = vrot.slane %v1876_v42, 1 }
 0x1ac   : > { %v2008_v21 = vsel %vm387_vm4, %v3903_v57, %v2007_v17  ;;  %v2121_v57 = vrot.slane %v1868_v61, 2 }
 0x1af   : > { %3038 = vmatmul.mubr.msk.bf16.vlgmr.msra.gmra.mrb[0].mxu1 %vm254_vm6, %v1772_v14  ;;  %v2001_v14 = vrot.slane %v1872_v19, 1 }
 0x1b0   : > { %3046 = vmatpush3.bf16.msra.mxu1 %v1900_v8  ;;  %3041 = vmatprep.mubr.msk.bf16.mxu1 %vm254_vm6, %v1773_v12  ;;  %v1874_v8 = vld [vmem:[#allocation3 + $0x58] sm:$0x3]  ;;  %v1998_v12 = vrot.slane %v1870_v20, 1 }
 0x1b1   : > { %3246 = vmatprep.subr.msk.bf16.mxu1 %vm1590_vm9, %v2805_v18  ;;  %v2004_v41 = vrot.slane %v1874_v8, 1  ;;  %v2002_v26 = vsel %vm387_vm4, %v3873_v34, %v2001_v14  ;;  %v1880_v18 = vld [vmem:[#allocation3 + $0x88] sm:$0x3]  ;;  %v2815_v34 = vld [vmem:[%s4195_s3 + $0x18] sm:$0xf] }
 0x1b2   : > { %v1999_v53 = vsel %vm387_vm4, %v3840_v33, %v1998_v12  ;;  %v2139_v20 = vrot.slane %v1880_v18, 2 }
 0x1b3   : > { %v2024_v54 = vpack.c.bf16 %v2002_v26, %v1999_v53  ;;  %v2005_v2 = vsel %vm387_vm4, %v3886_v32, %v2004_v41  ;;  %v2825_v41 = vld [vmem:[%s4195_s3 + $0x20] sm:$0xf] }
 0x1b7   : > { %3042 = vmatmul.mubr.msk.bf16.gmra.mrb[4].mxu1 %vm254_vm6, %v1774_v51  ;;  %v1878_v51 = vld [vmem:[#allocation3 + $0x78] sm:$0x3] }
 0x1b8   : > { %3047 = vmatprep.mubr.msk.bf16.mxu1 %vm254_vm6, %v1881_v59  ;;  %v2012_v59 = vrot.slane %v4069_v11, 1  ;;  %v2010_v33 = vrot.slane %v1878_v51, 1  ;;  %v2136_v15 = vrot.slane %v1878_v51, 2 }
 0x1ba   : > { %v2011_v60 = vsel %vm387_vm4, %v3890_v23, %v2010_v33 }
 0x1bf   : > { %3048 = vmatmul.mubr.msk.bf16.vlgmr.msra.gmra.mrb[0].mxu1 %vm254_vm6, %v1882_v30  ;;  %v2025_v30 = vpack.c.bf16 %v2008_v21, %v2005_v2  ;;  %v2259_v21 = vld [vmem:[#allocation3 + $0x98] sm:$0x3] }
 0x1c0   : > { %3056 = vmatpush3.bf16.msra.mxu1 %v2042_v62  ;;  %3051 = vmatprep.mubr.msk.bf16.mxu1 %vm254_vm6, %v1883_v0  ;;  %v2013_v62 = vrot.slane %v1880_v18, 1  ;;  %v2118_v0 = vrot.slane %v1866_v47, 2  ;;  %v2133_v47 = vrot.slane %v1876_v42, 2  ;;  %v2138_v42 = vrot.slane %v4069_v11, 2 }
 0x1c1   : > { %3247 = vmatprep.subr.msk.bf16.mxu1 %vm1590_vm9, %v2810_v36  ;;  %v2122_v36 = vsel %vm587_vm5, %v3938_v10, %v2121_v57  ;;  %v2518_v7 = vrot.slane %v2259_v21, 2 }
 0x1c2   : > { %v2014_v32 = vsel %vm387_vm4, %v2012_v59, %v2013_v62  ;;  %v2119_v61 = vsel %vm587_vm5, %v1742_v55, %v2118_v0  ;;  %v2134_v23 = vsel %vm587_vm5, %v3987_v3, %v2133_v47  ;;  %v2279_v55 = vsel %vm1590_vm9, %v2815_v34, 0 }
 0x1c3   : > { %v2026_v40 = vpack.c.bf16 %v2014_v32, %v2011_v60  ;;  %v2149_v49 = vpack.c.bf16 %v2122_v36, %v2119_v61  ;;  %v2140_v3 = vsel %vm587_vm5, %v2138_v42, %v2139_v20 }
 0x1c7   : > { %3052 = vmatmul.mubr.msk.bf16.gmra.mrb[4].mxu1 %vm254_vm6, %v1884_v6  ;;  %v2127_v6 = vrot.slane %v1872_v19, 2 }
 0x1c8   : > { %3057 = vmatprep.mubr.msk.bf16.mxu1 %vm254_vm6, %v2023_v63  ;;  %v2130_v63 = vrot.slane %v1874_v8, 2 }
 0x1c9   : > { %v2128_v10 = vsel %vm587_vm5, %v3950_v52, %v2127_v6  ;;  %v2820_v52 = vld [vmem:[%s4195_s3 + $0x1c] sm:$0xf] }
 0x1ca   : > { %v2150_v14 = vpack.c.bf16 %v2128_v10, %v2125_v48  ;;  %v2131_v19 = vsel %vm587_vm5, %v3958_v13, %v2130_v63  ;;  %v2137_v13 = vsel %vm587_vm5, %v3953_v22, %v2136_v15  ;;  %v2421_v12 = vsel %vm1590_vm9, %v2820_v52, 0  ;;  %v2258_v22 = vld [vmem:[#allocation3 + $0x90] sm:$0xff] }
 0x1cb   : > { %v2151_v17 = vpack.c.bf16 %v2134_v23, %v2131_v19  ;;  %v2152_v8 = vpack.c.bf16 %v2140_v3, %v2137_v13  ;;  %v2263_v26 = vpack.c.bf16 %v2258_v22, %v4069_v11  ;;  %v2391_v18 = vrot.slane %v2258_v22, 1 }
 0x1cf   : > { %3058 = vmatmul.mubr.msk.bf16.vlgmr.msra.gmra.mrb[0].mxu1 %vm254_vm6, %v2024_v54  ;;  %v2392_v54 = vrot.slane %v2259_v21, 1 }
 0x1d0   : > { %3066 = vmatpush3.bf16.msra.mxu1 %v2168_v43  ;;  %3061 = vmatprep.mubr.msk.bf16.mxu1 %vm254_vm6, %v2025_v30 }
 0x1d1   : > { %3248 = vmatprep.subr.msk.bf16.mxu1 %vm1590_vm9, %v2815_v34  ;;  %v2393_v4 = vsel %vm387_vm4, %v2391_v18, %v2392_v54 }
 0x1d7   : > { %3062 = vmatmul.mubr.msk.bf16.gmra.mrb[4].mxu1 %vm254_vm6, %v2026_v40 }
 0x1d8   : > { %3067 = vmatprep.mubr.msk.bf16.mxu1 %vm254_vm6, %v2149_v49 }
 0x1df   : > { %3068 = vmatmul.mubr.msk.bf16.vlgmr.msra.gmra.mrb[0].mxu1 %vm254_vm6, %v2150_v14 }
 0x1e0   : > { %3076 = vmatpush3.bf16.msra.mxu1 %v2279_v55  ;;  %3071 = vmatprep.mubr.msk.bf16.mxu1 %vm254_vm6, %v2151_v17 }
 0x1e1   : > { %3249 = vmatprep.subr.msk.bf16.mxu1 %vm1590_vm9, %v2820_v52 }
 0x1e7   : > { %3072 = vmatmul.mubr.msk.bf16.gmra.mrb[4].mxu1 %vm254_vm6, %v2152_v8 }
 0x1e8   : > { %3077 = vmatprep.mubr.msk.bf16.mxu1 %vm254_vm6, %v3929_v46  ;;  %v2257_v46 = vld [vmem:[#allocation3 + $0x88] sm:$0x3] }
 0x1e9   : > { %v2389_v53 = vrot.slane %v2257_v46, 1  ;;  %v2515_v24 = vrot.slane %v2257_v46, 2 }
 0x1eb   : > { %v2516_v5 = vsel %vm587_vm5, %v2138_v42, %v2515_v24 }
 0x1ef   : > { %3078 = vmatmul.mubr.msk.bf16.vlgmr.msra.gmra.mrb[0].mxu1 %vm254_vm6, %v3934_v29  ;;  %v2547_v29 = vsel %vm1590_vm9, %v2825_v41, 0 }
 0x1f0   : > { %3086 = vmatpush3.bf16.msra.mxu1 %v2421_v12  ;;  %3081 = vmatprep.mubr.msk.bf16.mxu1 %vm254_vm6, %v3962_v16  ;;  %v2390_v16 = vsel %vm387_vm4, %v2012_v59, %v2389_v53 }
 0x1f1   : > { %3250 = vmatprep.subr.msk.bf16.mxu1 %vm1590_vm9, %v2825_v41  ;;  %v2405_v50 = vpack.c.bf16 %v2393_v4, %v2390_v16 }
 0x1f7   : > { %3082 = vmatmul.mubr.msk.bf16.gmra.mrb[4].mxu1 %vm254_vm6, %v2263_v26 }
 0x1f8   : > { %3087 = vmatprep.mubr.msk.bf16.mxu1 %vm254_vm6, %v2402_v35  ;;  %v2517_v35 = vrot.slane %v2258_v22, 2 }
 0x1ff   : > { %3088 = vmatmul.mubr.msk.bf16.vlgmr.msra.gmra.mrb[0].mxu1 %vm254_vm6, %v2403_v38  ;;  %v2519_v38 = vsel %vm587_vm5, %v2517_v35, %v2518_v7 }
 0x200   : > { %3096 = vmatpush3.bf16.msra.mxu1 %v2547_v29  ;;  %3091 = vmatprep.mubr.msk.bf16.mxu1 %vm254_vm6, %v2404_v58  ;;  %v2531_v56 = vpack.c.bf16 %v2519_v38, %v2516_v5  ;;  %v2830_v58 = vld [vmem:[%s4196_s4] ss:$0 sm:$0xff] }
 0x207   : > { %3092 = vmatmul.mubr.msk.bf16.gmra.mrb[4].mxu1 %vm254_vm6, %v2405_v50 }
 0x208   : > { %3097 = vmatprep.mubr.msk.bf16.mxu1 %vm254_vm6, %v2528_v37 }
 0x20f   : > { %3098 = vmatmul.mubr.msk.bf16.vlgmr.msra.gmra.mrb[0].mxu1 %vm254_vm6, %v2529_v31 }
 0x210   : > { %3101 = vmatprep.mubr.msk.bf16.mxu1 %vm254_vm6, %v2530_v9 }
 0x217   : > { %3102 = vmatmul.mubr.msk.bf16.gmra.mrb[4].mxu1 %vm254_vm6, %v2531_v56 }
 0x2e2   : > { %v3099_v1 = vpop.f32.mrb[0].mxu1 }
 0x2e3   : > { %v2631_v44 = vadd.f32 %v3099_v1, %v2830_v58  ;;  %v2583_v25 = vpop.f32.mrb[1].mxu1 }
 0x2e4   : > { %v2629_v45 = vadd.f32 %v2830_v58, %v2583_v25  ;;  %v3100_v37 = vpop.f32.mrb[2].mxu1 }
 0x2e5   : > { %v2639_v31 = vmax.f32 %v2631_v44, 0.0  ;;  %v2632_v27 = vadd.f32 %v3100_v37, %v2830_v58  ;;  %v2586_v28 = vpop.f32.mrb[3].mxu1 }
 0x2e6   : > { %v2637_v9 = vmax.f32 %v2629_v45, 0.0  ;;  %v2630_v11 = vadd.f32 %v2830_v58, %v2586_v28 }
 0x2e7   : > { %2647 = vst.msk [vmem:[%s224_s21 + $0x10] sm:$0xff] %vm254_vm6, %v2639_v31  ;;  %v2640_v43 = vmax.f32 %v2632_v27, 0.0 }
 0x2e8   : > { %2645 = vst.msk [vmem:[%s224_s21] sm:$0xff] %vm254_vm6, %v2637_v9  ;;  %v2638_v2 = vmax.f32 %v2630_v11, 0.0 }
 0x2e9   : > { %2648 = vst.msk [vmem:[%s224_s21 + $0x18] sm:$0xff] %vm254_vm6, %v2640_v43 }
 0x2ea   : > { %2646 = vst.msk [vmem:[%s224_s21 + $0x8] sm:$0xff] %vm254_vm6, %v2638_v2  ;;  %v3103_v51 = vpop.f32.mrb[4].mxu1 }
 0x2eb   : > { %v2635_v59 = vadd.f32 %v3103_v51, %v2830_v58  ;;  %v2599_v30 = vpop.f32.mrb[5].mxu1 }
 0x2ec   : > { %v2633_v62 = vadd.f32 %v2830_v58, %v2599_v30  ;;  %v3104_v34 = vpop.f32.mrb[6].mxu1 }
 0x2ed   : > { %v2643_v57 = vmax.f32 %v2635_v59, 0.0  ;;  %v2636_v33 = vadd.f32 %v3104_v34, %v2830_v58  ;;  %v2602_v0 = vpop.f32.mrb[7].mxu1 }
 0x2ee   : > { %v2641_v32 = vmax.f32 %v2633_v62, 0.0  ;;  %v2634_v36 = vadd.f32 %v2830_v58, %v2602_v0 }
 0x2ef   : > { %2651 = vst.msk [vmem:[%s224_s21 + $0x30] sm:$0xff] %vm254_vm6, %v2643_v57  ;;  %v2644_v60 = vmax.f32 %v2636_v33, 0.0 }
 0x2f0   : > { %2649 = vst.msk [vmem:[%s224_s21 + $0x20] sm:$0xff] %vm254_vm6, %v2641_v32  ;;  %v2642_v40 = vmax.f32 %v2634_v36, 0.0 }
 0x2f1   : > { %2652 = vst.msk [vmem:[%s224_s21 + $0x38] sm:$0xff] %vm254_vm6, %v2644_v60 }
 0x2f2   : > { %2650 = vst.msk [vmem:[%s224_s21 + $0x28] sm:$0xff] %vm254_vm6, %v2642_v40 }
 0x2f3 PF: > { %s15_s18 = sadd.s32 1, %s3266_s18  }
 0x2f4   : > { %p12_p4 = scmp.ge.s32.totalorder %s15_s18, 4  }
 0x2f6   :  { %14 = sbr.rel (!%p12_p4) target bundleno = 1 (0x1), region = 95 }

</bundles_post_ra>
